<compile_context>
chip_gen: v7x
topology: tpu7x:2x2x1
jax: 0.10.0
libtpu: 0.0.40
codegen_flags: <defaults>
</compile_context>

<pallas_src>
import jax
import jax.numpy as jnp
import numpy as np
from jax.experimental import pallas as pl
from jax.experimental.pallas import tpu as pltpu

# --- model dims (byt5-small: d_model = 1472, speaker dim = 256, byte vocab = 384) ---
B = 2        # batch
S = 8        # sequence length (small for the demo)
V = 384      # byt5 vocab size (3 * 128, lane friendly)
D = 1472     # hidden size (matches nn.Linear(256, 1472) output)
SPK = 256    # speaker embedding dim (matches nn.Linear(256, 1472) input)


def byt5_prep_kernel(ids_ref, spk_ref, w_ref, b_ref, table_ref, out_ref):
    """Fused: speaker projection (MXU) + VMEM-resident embedding gather + broadcast add.

    ids_ref   : (B, S)    int32   token ids        (SMEM, scalar-prefetched)
    spk_ref   : (B, SPK)  float32 speaker vectors  (VMEM)
    w_ref     : (SPK, D)  float32 projection weight
    b_ref     : (1, D)    float32 projection bias
    table_ref : (V, D)    float32 embedding table  (VMEM-resident, ~2.26 MB)
    out_ref   : (B, S, D) float32 input_embeds
    """
    bsz, seq = ids_ref.shape
    vocab = table_ref.shape[0]

    # 1) Speaker projection for the whole batch in ONE MXU pass: (B, SPK) @ (SPK, D) + bias.
    proj = jnp.dot(spk_ref[...], w_ref[...],
                   preferred_element_type=jnp.float32) + b_ref[...]        # (B, D)

    # 2) Embedding row gather straight out of the VMEM-resident table (no DMA, no semaphores).
    #    B*S is tiny -> static Python unroll; each row is a dynamic sublane slice.
    for b in range(bsz):
        proj_row = proj[b:b + 1, :]                                        # (1, D)
        for s in range(seq):
            tok = ids_ref[b, s]
            # Defensive clamp: padding ids (e.g. -100) would otherwise read OOB.
            # (PyTorch nn.Embedding would error instead; such positions are masked
            #  downstream by attention_mask, so mapping them to row 0 is benign.)
            tok = jnp.minimum(jnp.maximum(tok, 0), vocab - 1)
            row = table_ref[pl.ds(tok, 1), :]                              # (1, D)
            # 3) Broadcast add on the VPU, lane-dense store (last dim = full D).
            out_ref[b, pl.ds(s, 1), :] = (row + proj_row).astype(out_ref.dtype)


def byt5_wrapper_prep(input_ids, embed_table, speaker, proj_w, proj_b):
    """Returns input_embeds = embed_tokens(input_ids) + speaker_projection(speaker)[:, None, :]."""
    bsz, seq = input_ids.shape
    vocab, dmodel = embed_table.shape
    spk_dim = speaker.shape[1]
    proj_b2 = proj_b.reshape(1, dmodel)

    grid_spec = pltpu.PrefetchScalarGridSpec(
        num_scalar_prefetch=1,          # input_ids -> SMEM
        grid=(1,),                      # single step: whole problem is ~4 MB of VMEM blocks
        in_specs=[
            pl.BlockSpec((bsz, spk_dim), lambda i, ids: (0, 0)),
            pl.BlockSpec((spk_dim, dmodel), lambda i, ids: (0, 0)),
            pl.BlockSpec((1, dmodel), lambda i, ids: (0, 0)),
            # Embedding table is small enough to live in VMEM for the whole call.
            pl.BlockSpec((vocab, dmodel), lambda i, ids: (0, 0)),
        ],
        out_specs=pl.BlockSpec((bsz, seq, dmodel), lambda i, ids: (0, 0, 0)),
    )

    return pl.pallas_call(
        byt5_prep_kernel,
        out_shape=jax.ShapeDtypeStruct((bsz, seq, dmodel), jnp.float32),
        grid_spec=grid_spec,
        compiler_params=pltpu.CompilerParams(
            dimension_semantics=("arbitrary",)),
    )(input_ids.astype(jnp.int32), speaker, proj_w, proj_b2, embed_table)


if __name__ == "__main__":
    key = jax.random.PRNGKey(0)
    k_ids, k_tab, k_spk, k_w, k_b = jax.random.split(key, 5)

    # Deterministic synthetic parameters / inputs (no checkpoint loading).
    input_ids = jax.random.randint(k_ids, (B, S), 0, V, dtype=jnp.int32)
    embed_table = jax.random.normal(k_tab, (V, D), dtype=jnp.float32) * 0.02
    speaker = jax.random.normal(k_spk, (B, SPK), dtype=jnp.float32)
    proj_w = jax.random.normal(k_w, (SPK, D), dtype=jnp.float32) * 0.02
    proj_b = jax.random.normal(k_b, (D,), dtype=jnp.float32) * 0.02

    out = byt5_wrapper_prep(input_ids, embed_table, speaker, proj_w, proj_b)
    out = jax.block_until_ready(out)

    # Pure-JAX reference of the same forward-prep semantics.
    ref = jnp.take(embed_table, input_ids, axis=0) + (speaker @ proj_w + proj_b)[:, None, :]
    assert out.shape == (B, S, D)
    np.testing.assert_allclose(np.asarray(out), np.asarray(ref), rtol=1e-5, atol=1e-5)

    print("KERNEL_OK")
</pallas_src>

<mosaic_0001>
module attributes {stable_mosaic.version = 11 : i64} {
  func.func @byt5_prep_kernel(%arg0: i32, %arg1: memref<2x8xi32, #tpu.memory_space<smem>>, %arg2: memref<2x256xf32, #tpu.memory_space<vmem>>, %arg3: memref<256x1472xf32, #tpu.memory_space<vmem>>, %arg4: memref<1x1472xf32, #tpu.memory_space<vmem>>, %arg5: memref<384x1472xf32, #tpu.memory_space<vmem>>, %arg6: memref<2x8x1472xf32, #tpu.memory_space<vmem>>) attributes {dimension_semantics = [#tpu.dimension_semantics<arbitrary>], iteration_bounds = array<i64: 1>, scalar_prefetch = 1 : i64, scratch_operands = 0 : i64, tpu.core_type = #tpu.core_type<tc>, window_params = [{pipeline_mode = #tpu.pipeline_mode<synchronous>, transform_indices = @transform_0, window_bounds = array<i64: 2, 256>}, {pipeline_mode = #tpu.pipeline_mode<synchronous>, transform_indices = @transform_1, window_bounds = array<i64: 256, 1472>}, {pipeline_mode = #tpu.pipeline_mode<synchronous>, transform_indices = @transform_2, window_bounds = array<i64: 1, 1472>}, {pipeline_mode = #tpu.pipeline_mode<synchronous>, transform_indices = @transform_3, window_bounds = array<i64: 384, 1472>}, {pipeline_mode = #tpu.pipeline_mode<synchronous>, transform_indices = @transform_4, window_bounds = array<i64: 2, 8, 1472>}]} {
    %c0 = arith.constant 0 : index
    %c0_0 = arith.constant 0 : index
    %0 = vector.load %arg2[%c0, %c0_0] : memref<2x256xf32, #tpu.memory_space<vmem>>, vector<2x256xf32>
    %c0_1 = arith.constant 0 : index
    %c0_2 = arith.constant 0 : index
    %1 = vector.load %arg3[%c0_1, %c0_2] : memref<256x1472xf32, #tpu.memory_space<vmem>>, vector<256x1472xf32>
    %cst = arith.constant dense<0.000000e+00> : vector<2x1472xf32>
    %2 = tpu.matmul %0, %1, %cst {dimension_numbers = #tpu.dot_dimension_numbers<[1], [0], [0], [1], [0, 0, 1, 1], [], []>} : vector<2x256xf32>, vector<256x1472xf32>, vector<2x1472xf32> -> vector<2x1472xf32>
    %c0_3 = arith.constant 0 : index
    %c0_4 = arith.constant 0 : index
    %3 = vector.load %arg4[%c0_3, %c0_4] : memref<1x1472xf32, #tpu.memory_space<vmem>>, vector<1x1472xf32>
    %4 = vector.broadcast %3 : vector<1x1472xf32> to vector<2x1472xf32>
    %5 = arith.addf %2, %4 : vector<2x1472xf32>
    %6 = vector.extract_strided_slice %5 {offsets = [0, 0], sizes = [1, 1472], strides = [1, 1]} : vector<2x1472xf32> to vector<1x1472xf32>
    %c0_5 = arith.constant 0 : index
    %c0_6 = arith.constant 0 : index
    %7 = memref.load %arg1[%c0_5, %c0_6] : memref<2x8xi32, #tpu.memory_space<smem>>
    %c0_i32 = arith.constant 0 : i32
    %8 = arith.maxsi %7, %c0_i32 : i32
    %c383_i32 = arith.constant 383 : i32
    %9 = arith.minsi %8, %c383_i32 : i32
    %10 = arith.index_cast %9 : i32 to index
    %c0_7 = arith.constant 0 : index
    %11 = vector.load %arg5[%10, %c0_7] : memref<384x1472xf32, #tpu.memory_space<vmem>>, vector<1x1472xf32>
    %12 = arith.addf %11, %6 : vector<1x1472xf32>
    %c0_8 = arith.constant 0 : index
    %c0_9 = arith.constant 0 : index
    %c0_10 = arith.constant 0 : index
    %13 = vector.load %arg6[%c0_8, %c0_9, %c0_10] : memref<2x8x1472xf32, #tpu.memory_space<vmem>>, vector<1x1x1472xf32>
    %14 = vector.shape_cast %13 : vector<1x1x1472xf32> to vector<1x1472xf32>
    %15 = vector.shape_cast %12 : vector<1x1472xf32> to vector<1x1x1472xf32>
    tpu.vector_store %arg6[%c0_8, %c0_9, %c0_10], %15 {strides = array<i32>} : memref<2x8x1472xf32, #tpu.memory_space<vmem>>, vector<1x1x1472xf32>,
    %c0_11 = arith.constant 0 : index
    %c1 = arith.constant 1 : index
    %16 = memref.load %arg1[%c0_11, %c1] : memref<2x8xi32, #tpu.memory_space<smem>>
    %c0_i32_12 = arith.constant 0 : i32
    %17 = arith.maxsi %16, %c0_i32_12 : i32
    %c383_i32_13 = arith.constant 383 : i32
    %18 = arith.minsi %17, %c383_i32_13 : i32
    %19 = arith.index_cast %18 : i32 to index
    %c0_14 = arith.constant 0 : index
    %20 = vector.load %arg5[%19, %c0_14] : memref<384x1472xf32, #tpu.memory_space<vmem>>, vector<1x1472xf32>
    %21 = arith.addf %20, %6 : vector<1x1472xf32>
    %c0_15 = arith.constant 0 : index
    %c1_16 = arith.constant 1 : index
    %c0_17 = arith.constant 0 : index
    %22 = vector.load %arg6[%c0_15, %c1_16, %c0_17] : memref<2x8x1472xf32, #tpu.memory_space<vmem>>, vector<1x1x1472xf32>
    %23 = vector.shape_cast %22 : vector<1x1x1472xf32> to vector<1x1472xf32>
    %24 = vector.shape_cast %21 : vector<1x1472xf32> to vector<1x1x1472xf32>
    tpu.vector_store %arg6[%c0_15, %c1_16, %c0_17], %24 {strides = array<i32>} : memref<2x8x1472xf32, #tpu.memory_space<vmem>>, vector<1x1x1472xf32>,
    %c0_18 = arith.constant 0 : index
    %c2 = arith.constant 2 : index
    %25 = memref.load %arg1[%c0_18, %c2] : memref<2x8xi32, #tpu.memory_space<smem>>
    %c0_i32_19 = arith.constant 0 : i32
    %26 = arith.maxsi %25, %c0_i32_19 : i32
    %c383_i32_20 = arith.constant 383 : i32
    %27 = arith.minsi %26, %c383_i32_20 : i32
    %28 = arith.index_cast %27 : i32 to index
    %c0_21 = arith.constant 0 : index
    %29 = vector.load %arg5[%28, %c0_21] : memref<384x1472xf32, #tpu.memory_space<vmem>>, vector<1x1472xf32>
    %30 = arith.addf %29, %6 : vector<1x1472xf32>
    %c0_22 = arith.constant 0 : index
    %c2_23 = arith.constant 2 : index
    %c0_24 = arith.constant 0 : index
    %31 = vector.load %arg6[%c0_22, %c2_23, %c0_24] : memref<2x8x1472xf32, #tpu.memory_space<vmem>>, vector<1x1x1472xf32>
    %32 = vector.shape_cast %31 : vector<1x1x1472xf32> to vector<1x1472xf32>
    %33 = vector.shape_cast %30 : vector<1x1472xf32> to vector<1x1x1472xf32>
    tpu.vector_store %arg6[%c0_22, %c2_23, %c0_24], %33 {strides = array<i32>} : memref<2x8x1472xf32, #tpu.memory_space<vmem>>, vector<1x1x1472xf32>,
    %c0_25 = arith.constant 0 : index
    %c3 = arith.constant 3 : index
    %34 = memref.load %arg1[%c0_25, %c3] : memref<2x8xi32, #tpu.memory_space<smem>>
    %c0_i32_26 = arith.constant 0 : i32
    %35 = arith.maxsi %34, %c0_i32_26 : i32
    %c383_i32_27 = arith.constant 383 : i32
    %36 = arith.minsi %35, %c383_i32_27 : i32
    %37 = arith.index_cast %36 : i32 to index
    %c0_28 = arith.constant 0 : index
    %38 = vector.load %arg5[%37, %c0_28] : memref<384x1472xf32, #tpu.memory_space<vmem>>, vector<1x1472xf32>
    %39 = arith.addf %38, %6 : vector<1x1472xf32>
    %c0_29 = arith.constant 0 : index
    %c3_30 = arith.constant 3 : index
    %c0_31 = arith.constant 0 : index
    %40 = vector.load %arg6[%c0_29, %c3_30, %c0_31] : memref<2x8x1472xf32, #tpu.memory_space<vmem>>, vector<1x1x1472xf32>
    %41 = vector.shape_cast %40 : vector<1x1x1472xf32> to vector<1x1472xf32>
    %42 = vector.shape_cast %39 : vector<1x1472xf32> to vector<1x1x1472xf32>
    tpu.vector_store %arg6[%c0_29, %c3_30, %c0_31], %42 {strides = array<i32>} : memref<2x8x1472xf32, #tpu.memory_space<vmem>>, vector<1x1x1472xf32>,
    %c0_32 = arith.constant 0 : index
    %c4 = arith.constant 4 : index
    %43 = memref.load %arg1[%c0_32, %c4] : memref<2x8xi32, #tpu.memory_space<smem>>
    %c0_i32_33 = arith.constant 0 : i32
    %44 = arith.maxsi %43, %c0_i32_33 : i32
    %c383_i32_34 = arith.constant 383 : i32
    %45 = arith.minsi %44, %c383_i32_34 : i32
    %46 = arith.index_cast %45 : i32 to index
    %c0_35 = arith.constant 0 : index
    %47 = vector.load %arg5[%46, %c0_35] : memref<384x1472xf32, #tpu.memory_space<vmem>>, vector<1x1472xf32>
    %48 = arith.addf %47, %6 : vector<1x1472xf32>
    %c0_36 = arith.constant 0 : index
    %c4_37 = arith.constant 4 : index
    %c0_38 = arith.constant 0 : index
    %49 = vector.load %arg6[%c0_36, %c4_37, %c0_38] : memref<2x8x1472xf32, #tpu.memory_space<vmem>>, vector<1x1x1472xf32>
    %50 = vector.shape_cast %49 : vector<1x1x1472xf32> to vector<1x1472xf32>
    %51 = vector.shape_cast %48 : vector<1x1472xf32> to vector<1x1x1472xf32>
    tpu.vector_store %arg6[%c0_36, %c4_37, %c0_38], %51 {strides = array<i32>} : memref<2x8x1472xf32, #tpu.memory_space<vmem>>, vector<1x1x1472xf32>,
    %c0_39 = arith.constant 0 : index
    %c5 = arith.constant 5 : index
    %52 = memref.load %arg1[%c0_39, %c5] : memref<2x8xi32, #tpu.memory_space<smem>>
    %c0_i32_40 = arith.constant 0 : i32
    %53 = arith.maxsi %52, %c0_i32_40 : i32
    %c383_i32_41 = arith.constant 383 : i32
    %54 = arith.minsi %53, %c383_i32_41 : i32
    %55 = arith.index_cast %54 : i32 to index
    %c0_42 = arith.constant 0 : index
    %56 = vector.load %arg5[%55, %c0_42] : memref<384x1472xf32, #tpu.memory_space<vmem>>, vector<1x1472xf32>
    %57 = arith.addf %56, %6 : vector<1x1472xf32>
    %c0_43 = arith.constant 0 : index
    %c5_44 = arith.constant 5 : index
    %c0_45 = arith.constant 0 : index
    %58 = vector.load %arg6[%c0_43, %c5_44, %c0_45] : memref<2x8x1472xf32, #tpu.memory_space<vmem>>, vector<1x1x1472xf32>
    %59 = vector.shape_cast %58 : vector<1x1x1472xf32> to vector<1x1472xf32>
    %60 = vector.shape_cast %57 : vector<1x1472xf32> to vector<1x1x1472xf32>
    tpu.vector_store %arg6[%c0_43, %c5_44, %c0_45], %60 {strides = array<i32>} : memref<2x8x1472xf32, #tpu.memory_space<vmem>>, vector<1x1x1472xf32>,
    %c0_46 = arith.constant 0 : index
    %c6 = arith.constant 6 : index
    %61 = memref.load %arg1[%c0_46, %c6] : memref<2x8xi32, #tpu.memory_space<smem>>
    %c0_i32_47 = arith.constant 0 : i32
    %62 = arith.maxsi %61, %c0_i32_47 : i32
    %c383_i32_48 = arith.constant 383 : i32
    %63 = arith.minsi %62, %c383_i32_48 : i32
    %64 = arith.index_cast %63 : i32 to index
    %c0_49 = arith.constant 0 : index
    %65 = vector.load %arg5[%64, %c0_49] : memref<384x1472xf32, #tpu.memory_space<vmem>>, vector<1x1472xf32>
    %66 = arith.addf %65, %6 : vector<1x1472xf32>
    %c0_50 = arith.constant 0 : index
    %c6_51 = arith.constant 6 : index
    %c0_52 = arith.constant 0 : index
    %67 = vector.load %arg6[%c0_50, %c6_51, %c0_52] : memref<2x8x1472xf32, #tpu.memory_space<vmem>>, vector<1x1x1472xf32>
    %68 = vector.shape_cast %67 : vector<1x1x1472xf32> to vector<1x1472xf32>
    %69 = vector.shape_cast %66 : vector<1x1472xf32> to vector<1x1x1472xf32>
    tpu.vector_store %arg6[%c0_50, %c6_51, %c0_52], %69 {strides = array<i32>} : memref<2x8x1472xf32, #tpu.memory_space<vmem>>, vector<1x1x1472xf32>,
    %c0_53 = arith.constant 0 : index
    %c7 = arith.constant 7 : index
    %70 = memref.load %arg1[%c0_53, %c7] : memref<2x8xi32, #tpu.memory_space<smem>>
    %c0_i32_54 = arith.constant 0 : i32
    %71 = arith.maxsi %70, %c0_i32_54 : i32
    %c383_i32_55 = arith.constant 383 : i32
    %72 = arith.minsi %71, %c383_i32_55 : i32
    %73 = arith.index_cast %72 : i32 to index
    %c0_56 = arith.constant 0 : index
    %74 = vector.load %arg5[%73, %c0_56] : memref<384x1472xf32, #tpu.memory_space<vmem>>, vector<1x1472xf32>
    %75 = arith.addf %74, %6 : vector<1x1472xf32>
    %c0_57 = arith.constant 0 : index
    %c7_58 = arith.constant 7 : index
    %c0_59 = arith.constant 0 : index
    %76 = vector.load %arg6[%c0_57, %c7_58, %c0_59] : memref<2x8x1472xf32, #tpu.memory_space<vmem>>, vector<1x1x1472xf32>
    %77 = vector.shape_cast %76 : vector<1x1x1472xf32> to vector<1x1472xf32>
    %78 = vector.shape_cast %75 : vector<1x1472xf32> to vector<1x1x1472xf32>
    tpu.vector_store %arg6[%c0_57, %c7_58, %c0_59], %78 {strides = array<i32>} : memref<2x8x1472xf32, #tpu.memory_space<vmem>>, vector<1x1x1472xf32>,
    %79 = vector.extract_strided_slice %5 {offsets = [1, 0], sizes = [1, 1472], strides = [1, 1]} : vector<2x1472xf32> to vector<1x1472xf32>
    %c1_60 = arith.constant 1 : index
    %c0_61 = arith.constant 0 : index
    %80 = memref.load %arg1[%c1_60, %c0_61] : memref<2x8xi32, #tpu.memory_space<smem>>
    %c0_i32_62 = arith.constant 0 : i32
    %81 = arith.maxsi %80, %c0_i32_62 : i32
    %c383_i32_63 = arith.constant 383 : i32
    %82 = arith.minsi %81, %c383_i32_63 : i32
    %83 = arith.index_cast %82 : i32 to index
    %c0_64 = arith.constant 0 : index
    %84 = vector.load %arg5[%83, %c0_64] : memref<384x1472xf32, #tpu.memory_space<vmem>>, vector<1x1472xf32>
    %85 = arith.addf %84, %79 : vector<1x1472xf32>
    %c1_65 = arith.constant 1 : index
    %c0_66 = arith.constant 0 : index
    %c0_67 = arith.constant 0 : index
    %86 = vector.load %arg6[%c1_65, %c0_66, %c0_67] : memref<2x8x1472xf32, #tpu.memory_space<vmem>>, vector<1x1x1472xf32>
    %87 = vector.shape_cast %86 : vector<1x1x1472xf32> to vector<1x1472xf32>
    %88 = vector.shape_cast %85 : vector<1x1472xf32> to vector<1x1x1472xf32>
    tpu.vector_store %arg6[%c1_65, %c0_66, %c0_67], %88 {strides = array<i32>} : memref<2x8x1472xf32, #tpu.memory_space<vmem>>, vector<1x1x1472xf32>,
    %c1_68 = arith.constant 1 : index
    %c1_69 = arith.constant 1 : index
    %89 = memref.load %arg1[%c1_68, %c1_69] : memref<2x8xi32, #tpu.memory_space<smem>>
    %c0_i32_70 = arith.constant 0 : i32
    %90 = arith.maxsi %89, %c0_i32_70 : i32
    %c383_i32_71 = arith.constant 383 : i32
    %91 = arith.minsi %90, %c383_i32_71 : i32
    %92 = arith.index_cast %91 : i32 to index
    %c0_72 = arith.constant 0 : index
    %93 = vector.load %arg5[%92, %c0_72] : memref<384x1472xf32, #tpu.memory_space<vmem>>, vector<1x1472xf32>
    %94 = arith.addf %93, %79 : vector<1x1472xf32>
    %c1_73 = arith.constant 1 : index
    %c1_74 = arith.constant 1 : index
    %c0_75 = arith.constant 0 : index
    %95 = vector.load %arg6[%c1_73, %c1_74, %c0_75] : memref<2x8x1472xf32, #tpu.memory_space<vmem>>, vector<1x1x1472xf32>
    %96 = vector.shape_cast %95 : vector<1x1x1472xf32> to vector<1x1472xf32>
    %97 = vector.shape_cast %94 : vector<1x1472xf32> to vector<1x1x1472xf32>
    tpu.vector_store %arg6[%c1_73, %c1_74, %c0_75], %97 {strides = array<i32>} : memref<2x8x1472xf32, #tpu.memory_space<vmem>>, vector<1x1x1472xf32>,
    %c1_76 = arith.constant 1 : index
    %c2_77 = arith.constant 2 : index
    %98 = memref.load %arg1[%c1_76, %c2_77] : memref<2x8xi32, #tpu.memory_space<smem>>
    %c0_i32_78 = arith.constant 0 : i32
    %99 = arith.maxsi %98, %c0_i32_78 : i32
    %c383_i32_79 = arith.constant 383 : i32
    %100 = arith.minsi %99, %c383_i32_79 : i32
    %101 = arith.index_cast %100 : i32 to index
    %c0_80 = arith.constant 0 : index
    %102 = vector.load %arg5[%101, %c0_80] : memref<384x1472xf32, #tpu.memory_space<vmem>>, vector<1x1472xf32>
    %103 = arith.addf %102, %79 : vector<1x1472xf32>
    %c1_81 = arith.constant 1 : index
    %c2_82 = arith.constant 2 : index
    %c0_83 = arith.constant 0 : index
    %104 = vector.load %arg6[%c1_81, %c2_82, %c0_83] : memref<2x8x1472xf32, #tpu.memory_space<vmem>>, vector<1x1x1472xf32>
    %105 = vector.shape_cast %104 : vector<1x1x1472xf32> to vector<1x1472xf32>
    %106 = vector.shape_cast %103 : vector<1x1472xf32> to vector<1x1x1472xf32>
    tpu.vector_store %arg6[%c1_81, %c2_82, %c0_83], %106 {strides = array<i32>} : memref<2x8x1472xf32, #tpu.memory_space<vmem>>, vector<1x1x1472xf32>,
    %c1_84 = arith.constant 1 : index
    %c3_85 = arith.constant 3 : index
    %107 = memref.load %arg1[%c1_84, %c3_85] : memref<2x8xi32, #tpu.memory_space<smem>>
    %c0_i32_86 = arith.constant 0 : i32
    %108 = arith.maxsi %107, %c0_i32_86 : i32
    %c383_i32_87 = arith.constant 383 : i32
    %109 = arith.minsi %108, %c383_i32_87 : i32
    %110 = arith.index_cast %109 : i32 to index
    %c0_88 = arith.constant 0 : index
    %111 = vector.load %arg5[%110, %c0_88] : memref<384x1472xf32, #tpu.memory_space<vmem>>, vector<1x1472xf32>
    %112 = arith.addf %111, %79 : vector<1x1472xf32>
    %c1_89 = arith.constant 1 : index
    %c3_90 = arith.constant 3 : index
    %c0_91 = arith.constant 0 : index
    %113 = vector.load %arg6[%c1_89, %c3_90, %c0_91] : memref<2x8x1472xf32, #tpu.memory_space<vmem>>, vector<1x1x1472xf32>
    %114 = vector.shape_cast %113 : vector<1x1x1472xf32> to vector<1x1472xf32>
    %115 = vector.shape_cast %112 : vector<1x1472xf32> to vector<1x1x1472xf32>
    tpu.vector_store %arg6[%c1_89, %c3_90, %c0_91], %115 {strides = array<i32>} : memref<2x8x1472xf32, #tpu.memory_space<vmem>>, vector<1x1x1472xf32>,
    %c1_92 = arith.constant 1 : index
    %c4_93 = arith.constant 4 : index
    %116 = memref.load %arg1[%c1_92, %c4_93] : memref<2x8xi32, #tpu.memory_space<smem>>
    %c0_i32_94 = arith.constant 0 : i32
    %117 = arith.maxsi %116, %c0_i32_94 : i32
    %c383_i32_95 = arith.constant 383 : i32
    %118 = arith.minsi %117, %c383_i32_95 : i32
    %119 = arith.index_cast %118 : i32 to index
    %c0_96 = arith.constant 0 : index
    %120 = vector.load %arg5[%119, %c0_96] : memref<384x1472xf32, #tpu.memory_space<vmem>>, vector<1x1472xf32>
    %121 = arith.addf %120, %79 : vector<1x1472xf32>
    %c1_97 = arith.constant 1 : index
    %c4_98 = arith.constant 4 : index
    %c0_99 = arith.constant 0 : index
    %122 = vector.load %arg6[%c1_97, %c4_98, %c0_99] : memref<2x8x1472xf32, #tpu.memory_space<vmem>>, vector<1x1x1472xf32>
    %123 = vector.shape_cast %122 : vector<1x1x1472xf32> to vector<1x1472xf32>
    %124 = vector.shape_cast %121 : vector<1x1472xf32> to vector<1x1x1472xf32>
    tpu.vector_store %arg6[%c1_97, %c4_98, %c0_99], %124 {strides = array<i32>} : memref<2x8x1472xf32, #tpu.memory_space<vmem>>, vector<1x1x1472xf32>,
    %c1_100 = arith.constant 1 : index
    %c5_101 = arith.constant 5 : index
    %125 = memref.load %arg1[%c1_100, %c5_101] : memref<2x8xi32, #tpu.memory_space<smem>>
    %c0_i32_102 = arith.constant 0 : i32
    %126 = arith.maxsi %125, %c0_i32_102 : i32
    %c383_i32_103 = arith.constant 383 : i32
    %127 = arith.minsi %126, %c383_i32_103 : i32
    %128 = arith.index_cast %127 : i32 to index
    %c0_104 = arith.constant 0 : index
    %129 = vector.load %arg5[%128, %c0_104] : memref<384x1472xf32, #tpu.memory_space<vmem>>, vector<1x1472xf32>
    %130 = arith.addf %129, %79 : vector<1x1472xf32>
    %c1_105 = arith.constant 1 : index
    %c5_106 = arith.constant 5 : index
    %c0_107 = arith.constant 0 : index
    %131 = vector.load %arg6[%c1_105, %c5_106, %c0_107] : memref<2x8x1472xf32, #tpu.memory_space<vmem>>, vector<1x1x1472xf32>
    %132 = vector.shape_cast %131 : vector<1x1x1472xf32> to vector<1x1472xf32>
    %133 = vector.shape_cast %130 : vector<1x1472xf32> to vector<1x1x1472xf32>
    tpu.vector_store %arg6[%c1_105, %c5_106, %c0_107], %133 {strides = array<i32>} : memref<2x8x1472xf32, #tpu.memory_space<vmem>>, vector<1x1x1472xf32>,
    %c1_108 = arith.constant 1 : index
    %c6_109 = arith.constant 6 : index
    %134 = memref.load %arg1[%c1_108, %c6_109] : memref<2x8xi32, #tpu.memory_space<smem>>
    %c0_i32_110 = arith.constant 0 : i32
    %135 = arith.maxsi %134, %c0_i32_110 : i32
    %c383_i32_111 = arith.constant 383 : i32
    %136 = arith.minsi %135, %c383_i32_111 : i32
    %137 = arith.index_cast %136 : i32 to index
    %c0_112 = arith.constant 0 : index
    %138 = vector.load %arg5[%137, %c0_112] : memref<384x1472xf32, #tpu.memory_space<vmem>>, vector<1x1472xf32>
    %139 = arith.addf %138, %79 : vector<1x1472xf32>
    %c1_113 = arith.constant 1 : index
    %c6_114 = arith.constant 6 : index
    %c0_115 = arith.constant 0 : index
    %140 = vector.load %arg6[%c1_113, %c6_114, %c0_115] : memref<2x8x1472xf32, #tpu.memory_space<vmem>>, vector<1x1x1472xf32>
    %141 = vector.shape_cast %140 : vector<1x1x1472xf32> to vector<1x1472xf32>
    %142 = vector.shape_cast %139 : vector<1x1472xf32> to vector<1x1x1472xf32>
    tpu.vector_store %arg6[%c1_113, %c6_114, %c0_115], %142 {strides = array<i32>} : memref<2x8x1472xf32, #tpu.memory_space<vmem>>, vector<1x1x1472xf32>,
    %c1_116 = arith.constant 1 : index
    %c7_117 = arith.constant 7 : index
    %143 = memref.load %arg1[%c1_116, %c7_117] : memref<2x8xi32, #tpu.memory_space<smem>>
    %c0_i32_118 = arith.constant 0 : i32
    %144 = arith.maxsi %143, %c0_i32_118 : i32
    %c383_i32_119 = arith.constant 383 : i32
    %145 = arith.minsi %144, %c383_i32_119 : i32
    %146 = arith.index_cast %145 : i32 to index
    %c0_120 = arith.constant 0 : index
    %147 = vector.load %arg5[%146, %c0_120] : memref<384x1472xf32, #tpu.memory_space<vmem>>, vector<1x1472xf32>
    %148 = arith.addf %147, %79 : vector<1x1472xf32>
    %c1_121 = arith.constant 1 : index
    %c7_122 = arith.constant 7 : index
    %c0_123 = arith.constant 0 : index
    %149 = vector.load %arg6[%c1_121, %c7_122, %c0_123] : memref<2x8x1472xf32, #tpu.memory_space<vmem>>, vector<1x1x1472xf32>
    %150 = vector.shape_cast %149 : vector<1x1x1472xf32> to vector<1x1472xf32>
    %151 = vector.shape_cast %148 : vector<1x1472xf32> to vector<1x1x1472xf32>
    tpu.vector_store %arg6[%c1_121, %c7_122, %c0_123], %151 {strides = array<i32>} : memref<2x8x1472xf32, #tpu.memory_space<vmem>>, vector<1x1x1472xf32>,
    return
  }
  func.func @transform_0(%arg0: i32, %arg1: memref<2x8xi32, #tpu.memory_space<smem>>) -> (i32, i32) {
    %c0_i32 = arith.constant 0 : i32
    %c0_i32_0 = arith.constant 0 : i32
    %c0_i32_1 = arith.constant 0 : i32
    return %c0_i32, %c0_i32_0 : i32, i32
  }
  func.func @transform_1(%arg0: i32, %arg1: memref<2x8xi32, #tpu.memory_space<smem>>) -> (i32, i32) {
    %c0_i32 = arith.constant 0 : i32
    %c0_i32_0 = arith.constant 0 : i32
    %c0_i32_1 = arith.constant 0 : i32
    return %c0_i32, %c0_i32_0 : i32, i32
  }
  func.func @transform_2(%arg0: i32, %arg1: memref<2x8xi32, #tpu.memory_space<smem>>) -> (i32, i32) {
    %c0_i32 = arith.constant 0 : i32
    %c0_i32_0 = arith.constant 0 : i32
    %c0_i32_1 = arith.constant 0 : i32
    return %c0_i32, %c0_i32_0 : i32, i32
  }
  func.func @transform_3(%arg0: i32, %arg1: memref<2x8xi32, #tpu.memory_space<smem>>) -> (i32, i32) {
    %c0_i32 = arith.constant 0 : i32
    %c0_i32_0 = arith.constant 0 : i32
    %c0_i32_1 = arith.constant 0 : i32
    return %c0_i32, %c0_i32_0 : i32, i32
  }
  func.func @transform_4(%arg0: i32, %arg1: memref<2x8xi32, #tpu.memory_space<smem>>) -> (i32, i32, i32) {
    %c0_i32 = arith.constant 0 : i32
    %c0_i32_0 = arith.constant 0 : i32
    %c0_i32_1 = arith.constant 0 : i32
    %c0_i32_2 = arith.constant 0 : i32
    return %c0_i32, %c0_i32_0, %c0_i32_1 : i32, i32, i32
  }
}

</mosaic_0001>

<bundles_post_ra>
// kernel: tpu_custom_call.1
= control target key start
LH: loop header
LB: loop body
LE: loop exit
PB: predicated region body
PF: predicated region fallthrough
CT: control target
= control target key end

     0   :  { %s3846_s0 = inlined_call_operand.vmem [shape: s32[2,8], index: 0, kind: input, shape index: {}]   ;;  %s3847_s1 = inlined_call_operand.vmem [shape: f32[2,256], index: 1, kind: input, shape index: {}]   ;;  %s3848_s2 = inlined_call_operand.vmem [shape: f32[256,1472], index: 2, kind: input, shape index: {}]   ;;  %s3849_s3 = inlined_call_operand.vmem [shape: f32[1,1472], index: 3, kind: input, shape index: {}]   ;;  %s3850_s4 = inlined_call_operand.vmem [shape: f32[384,1472], index: 4, kind: input, shape index: {}]   ;;  %s3851_s5 = inlined_call_operand.hbm [shape: f32[2,8,1472], index: 5, kind: output, shape index: {}]  }
   0x1   :  { %3854 = sst [smem:[#allocation8_spill]] %s3849_s3  ;;  %s10_s20 = sshll.u32 %s3846_s0, 4  ;;  %s11_s20 = int_to_ptr.vmem [resolvable:$true] %s10_s20 }
   0x2   :  { %3855 = sst [smem:[#allocation9_spill]] %s3851_s5  ;;  %s2217_s21 = scalar_lea.vmem %s11_s20, 32 }
   0x3   :  { %p2218_p0 = scmp.ne.s32.totalorder %s11_s20, %s2217_s21  ;;  %p2222_p1 = scmp.lt.s32.totalorder %s11_s20, %s11_s20 }
   0x4   :  { %p2223_p2 = scmp.lt.s32.totalorder %s2217_s21, %s2217_s21 }
   0x6   :  { %p2224_p3 = por %p2223_p2, %p2222_p1 }
   0x8   :  { %p2225_p4 = pnand %p2224_p3, %p2218_p0 }
   0xa   :  { %2228 = shalt.err (!%p2225_p4)  }
   0xb   :  { %s2255_s22 = smov [#allocation3]  }
   0xc   :  { %13 = dma.vmem_to_smem %s11_s20, 32, %s2255_s22, [#allocation2] }
   0xd   :  { %2251 = dma.done.wait [#allocation2], 32 }
   0xe   :  { %2252 = vsyncadd [#allocation2], 4294967264 }
   0xf   :  { %15 = sfence }
  0x10   :  { %v27_v0 = vld [vmem:[%s3848_s2 + $0x8] sm:$0xff]  ;;  %v29_v2 = vld [vmem:[%s3848_s2 + $0x18] sm:$0xff]  ;;  %v26_v5 = vld [vmem:[%s3848_s2] sm:$0xff] }
  0x11   :  { %v39_v1 = vld [vmem:[%s3848_s2 + $0x68] sm:$0xff]  ;;  %v41_v4 = vld [vmem:[%s3848_s2 + $0x78] sm:$0xff]  ;;  %v38_v6 = vld [vmem:[%s3848_s2 + $0x60] sm:$0xff] }
  0x12   :  { %v1827_v3 = vpack.c.bf16 %v39_v1, %v27_v0  ;;  %v1891_v7 = vpack.c.bf16 %v41_v4, %v29_v2  ;;  %v1829_v8 = vpack.c.bf16 %v38_v6, %v26_v5  ;;  %v28_v9 = vld [vmem:[%s3848_s2 + $0x10] sm:$0xff]  ;;  %v51_v11 = vld [vmem:[%s3848_s2 + $0xc8] sm:$0xff]  ;;  %v53_v14 = vld [vmem:[%s3848_s2 + $0xd8] sm:$0xff] }
  0x13   :  { %v40_v10 = vld [vmem:[%s3848_s2 + $0x70] sm:$0xff]  ;;  %v63_v13 = vld [vmem:[%s3848_s2 + $0x128] sm:$0xff]  ;;  %v65_v15 = vld [vmem:[%s3848_s2 + $0x138] sm:$0xff] }
  0x14   :  { %1828 = vmatprep.subr.bf16.mxu0 %v1827_v3  ;;  %v1893_v12 = vpack.c.bf16 %v40_v10, %v28_v9  ;;  %1892 = vmatprep.subr.bf16.mxu1 %v1891_v7  ;;  %v1831_v16 = vpack.c.bf16 %v63_v13, %v51_v11  ;;  %v1895_v17 = vpack.c.bf16 %v65_v15, %v53_v14  ;;  %v50_v18 = vld [vmem:[%s3848_s2 + $0xc0] sm:$0xff]  ;;  %v52_v20 = vld [vmem:[%s3848_s2 + $0xd0] sm:$0xff]  ;;  %v75_v23 = vld [vmem:[%s3848_s2 + $0x188] sm:$0xff] }
  0x15   :  { %1830 = vmatpush1.bf16.msra.mxu0 %v1829_v8  ;;  %v62_v19 = vld [vmem:[%s3848_s2 + $0x120] sm:$0xff]  ;;  %v64_v22 = vld [vmem:[%s3848_s2 + $0x130] sm:$0xff]  ;;  %v87_v24 = vld [vmem:[%s3848_s2 + $0x1e8] sm:$0xff] }
  0x16   :  { %1894 = vmatpush1.bf16.msra.mxu1 %v1893_v12  ;;  %v1833_v21 = vpack.c.bf16 %v62_v19, %v50_v18  ;;  %1832 = vmatprep.subr.bf16.mxu0 %v1831_v16  ;;  %v1897_v25 = vpack.c.bf16 %v64_v22, %v52_v20  ;;  %v1835_v26 = vpack.c.bf16 %v87_v24, %v75_v23  ;;  %v77_v27 = vld [vmem:[%s3848_s2 + $0x198] sm:$0xff]  ;;  %v74_v29 = vld [vmem:[%s3848_s2 + $0x180] sm:$0xff]  ;;  %v76_v32 = vld [vmem:[%s3848_s2 + $0x190] sm:$0xff] }
  0x17   :  { %1896 = vmatprep.subr.bf16.mxu1 %v1895_v17  ;;  %v89_v28 = vld [vmem:[%s3848_s2 + $0x1f8] sm:$0xff]  ;;  %v86_v31 = vld [vmem:[%s3848_s2 + $0x1e0] sm:$0xff]  ;;  %v88_v33 = vld [vmem:[%s3848_s2 + $0x1f0] sm:$0xff] }
  0x18   :  { %v1899_v30 = vpack.c.bf16 %v89_v28, %v77_v27  ;;  %v1837_v34 = vpack.c.bf16 %v86_v31, %v74_v29  ;;  %v99_v35 = vld [vmem:[%s3848_s2 + $0x248] sm:$0xff]  ;;  %v101_v37 = vld [vmem:[%s3848_s2 + $0x258] sm:$0xff]  ;;  %v1901_v38 = vpack.c.bf16 %v88_v33, %v76_v32  ;;  %v98_v41 = vld [vmem:[%s3848_s2 + $0x240] sm:$0xff] }
  0x19   :  { %1834 = vmatpush1.bf16.msra.mxu0 %v1833_v21  ;;  %v111_v36 = vld [vmem:[%s3848_s2 + $0x2a8] sm:$0xff]  ;;  %v113_v40 = vld [vmem:[%s3848_s2 + $0x2b8] sm:$0xff]  ;;  %v110_v42 = vld [vmem:[%s3848_s2 + $0x2a0] sm:$0xff] }
  0x1a   :  { %1898 = vmatpush1.bf16.msra.mxu1 %v1897_v25  ;;  %1836 = vmatprep.subr.bf16.mxu0 %v1835_v26  ;;  %v1839_v39 = vpack.c.bf16 %v111_v36, %v99_v35  ;;  %v1903_v43 = vpack.c.bf16 %v113_v40, %v101_v37  ;;  %v100_v44 = vld [vmem:[%s3848_s2 + $0x250] sm:$0xff]  ;;  %v123_v46 = vld [vmem:[%s3848_s2 + $0x308] sm:$0xff]  ;;  %v125_v48 = vld [vmem:[%s3848_s2 + $0x318] sm:$0xff]  ;;  %v1841_v50 = vpack.c.bf16 %v110_v42, %v98_v41 }
  0x1b   :  { %1900 = vmatprep.subr.bf16.mxu1 %v1899_v30  ;;  %v112_v45 = vld [vmem:[%s3848_s2 + $0x2b0] sm:$0xff]  ;;  %v135_v47 = vld [vmem:[%s3848_s2 + $0x368] sm:$0xff]  ;;  %v137_v49 = vld [vmem:[%s3848_s2 + $0x378] sm:$0xff] }
  0x1c   :  { %v1905_v51 = vpack.c.bf16 %v112_v45, %v100_v44  ;;  %v1843_v52 = vpack.c.bf16 %v135_v47, %v123_v46  ;;  %v122_v53 = vld [vmem:[%s3848_s2 + $0x300] sm:$0xff]  ;;  %v124_v55 = vld [vmem:[%s3848_s2 + $0x310] sm:$0xff]  ;;  %v1907_v56 = vpack.c.bf16 %v137_v49, %v125_v48  ;;  %v147_v58 = vld [vmem:[%s3848_s2 + $0x3c8] sm:$0xff] }
  0x1d   :  { %1838 = vmatpush1.bf16.msra.mxu0 %v1837_v34  ;;  %v134_v54 = vld [vmem:[%s3848_s2 + $0x360] sm:$0xff]  ;;  %v136_v57 = vld [vmem:[%s3848_s2 + $0x370] sm:$0xff]  ;;  %v159_v59 = vld [vmem:[%s3848_s2 + $0x428] sm:$0xff] }
  0x1e   :  { %1902 = vmatpush1.bf16.msra.mxu1 %v1901_v38  ;;  %1840 = vmatprep.subr.bf16.mxu0 %v1839_v39  ;;  %v149_v60 = vld [vmem:[%s3848_s2 + $0x3d8] sm:$0xff]  ;;  %v1845_v62 = vpack.c.bf16 %v134_v54, %v122_v53  ;;  %v1909_v63 = vpack.c.bf16 %v136_v57, %v124_v55  ;;  %v1847_v0 = vpack.c.bf16 %v159_v59, %v147_v58  ;;  %v146_v1 = vld [vmem:[%s3848_s2 + $0x3c0] sm:$0xff]  ;;  %v148_v3 = vld [vmem:[%s3848_s2 + $0x3d0] sm:$0xff] }
  0x1f   :  { %1904 = vmatprep.subr.bf16.mxu1 %v1903_v43  ;;  %v161_v61 = vld [vmem:[%s3848_s2 + $0x438] sm:$0xff]  ;;  %v158_v2 = vld [vmem:[%s3848_s2 + $0x420] sm:$0xff]  ;;  %v160_v5 = vld [vmem:[%s3848_s2 + $0x430] sm:$0xff] }
  0x20   :  { %v1911_v4 = vpack.c.bf16 %v161_v61, %v149_v60  ;;  %v171_v6 = vld [vmem:[%s3848_s2 + $0x488] sm:$0xff]  ;;  %v173_v8 = vld [vmem:[%s3848_s2 + $0x498] sm:$0xff]  ;;  %v1849_v10 = vpack.c.bf16 %v158_v2, %v146_v1  ;;  %v1913_v11 = vpack.c.bf16 %v160_v5, %v148_v3  ;;  %v170_v13 = vld [vmem:[%s3848_s2 + $0x480] sm:$0xff] }
  0x21   :  { %1842 = vmatpush1.bf16.msra.mxu0 %v1841_v50  ;;  %v183_v7 = vld [vmem:[%s3848_s2 + $0x4e8] sm:$0xff]  ;;  %v185_v9 = vld [vmem:[%s3848_s2 + $0x4f8] sm:$0xff]  ;;  %v182_v14 = vld [vmem:[%s3848_s2 + $0x4e0] sm:$0xff] }
  0x22   :  { %1906 = vmatpush1.bf16.msra.mxu1 %v1905_v51  ;;  %1844 = vmatprep.subr.bf16.mxu0 %v1843_v52  ;;  %v1851_v12 = vpack.c.bf16 %v183_v7, %v171_v6  ;;  %v172_v15 = vld [vmem:[%s3848_s2 + $0x490] sm:$0xff]  ;;  %v1915_v16 = vpack.c.bf16 %v185_v9, %v173_v8  ;;  %v195_v18 = vld [vmem:[%s3848_s2 + $0x548] sm:$0xff]  ;;  %v197_v20 = vld [vmem:[%s3848_s2 + $0x558] sm:$0xff]  ;;  %v1853_v22 = vpack.c.bf16 %v182_v14, %v170_v13 }
  0x23   :  { %1908 = vmatprep.subr.bf16.mxu1 %v1907_v56  ;;  %v184_v17 = vld [vmem:[%s3848_s2 + $0x4f0] sm:$0xff]  ;;  %v207_v19 = vld [vmem:[%s3848_s2 + $0x5a8] sm:$0xff]  ;;  %v209_v21 = vld [vmem:[%s3848_s2 + $0x5b8] sm:$0xff] }
  0x24   :  { %v1917_v23 = vpack.c.bf16 %v184_v17, %v172_v15  ;;  %v1855_v24 = vpack.c.bf16 %v207_v19, %v195_v18  ;;  %v194_v25 = vld [vmem:[%s3848_s2 + $0x540] sm:$0xff]  ;;  %v196_v27 = vld [vmem:[%s3848_s2 + $0x550] sm:$0xff]  ;;  %v1919_v28 = vpack.c.bf16 %v209_v21, %v197_v20  ;;  %v219_v30 = vld [vmem:[%s3848_s2 + $0x608] sm:$0xff] }
  0x25   :  { %1846 = vmatpush1.bf16.msra.mxu0 %v1845_v62  ;;  %v206_v26 = vld [vmem:[%s3848_s2 + $0x5a0] sm:$0xff]  ;;  %v208_v29 = vld [vmem:[%s3848_s2 + $0x5b0] sm:$0xff]  ;;  %v231_v31 = vld [vmem:[%s3848_s2 + $0x668] sm:$0xff] }
  0x26   :  { %1910 = vmatpush1.bf16.msra.mxu1 %v1909_v63  ;;  %1848 = vmatprep.subr.bf16.mxu0 %v1847_v0  ;;  %v221_v32 = vld [vmem:[%s3848_s2 + $0x618] sm:$0xff]  ;;  %v1857_v34 = vpack.c.bf16 %v206_v26, %v194_v25  ;;  %v1921_v35 = vpack.c.bf16 %v208_v29, %v196_v27  ;;  %v1859_v36 = vpack.c.bf16 %v231_v31, %v219_v30  ;;  %v218_v37 = vld [vmem:[%s3848_s2 + $0x600] sm:$0xff]  ;;  %v220_v39 = vld [vmem:[%s3848_s2 + $0x610] sm:$0xff] }
  0x27   :  { %1912 = vmatprep.subr.bf16.mxu1 %v1911_v4  ;;  %v233_v33 = vld [vmem:[%s3848_s2 + $0x678] sm:$0xff]  ;;  %v230_v38 = vld [vmem:[%s3848_s2 + $0x660] sm:$0xff]  ;;  %v232_v41 = vld [vmem:[%s3848_s2 + $0x670] sm:$0xff] }
  0x28   :  { %v1923_v40 = vpack.c.bf16 %v233_v33, %v221_v32  ;;  %v243_v42 = vld [vmem:[%s3848_s2 + $0x6c8] sm:$0xff]  ;;  %v245_v44 = vld [vmem:[%s3848_s2 + $0x6d8] sm:$0xff]  ;;  %v1861_v46 = vpack.c.bf16 %v230_v38, %v218_v37  ;;  %v1925_v47 = vpack.c.bf16 %v232_v41, %v220_v39  ;;  %v242_v49 = vld [vmem:[%s3848_s2 + $0x6c0] sm:$0xff] }
  0x29   :  { %1850 = vmatpush1.bf16.msra.mxu0 %v1849_v10  ;;  %v255_v43 = vld [vmem:[%s3848_s2 + $0x728] sm:$0xff]  ;;  %v257_v45 = vld [vmem:[%s3848_s2 + $0x738] sm:$0xff]  ;;  %v254_v50 = vld [vmem:[%s3848_s2 + $0x720] sm:$0xff] }
  0x2a   :  { %1914 = vmatpush1.bf16.msra.mxu1 %v1913_v11  ;;  %1852 = vmatprep.subr.bf16.mxu0 %v1851_v12  ;;  %v1863_v48 = vpack.c.bf16 %v255_v43, %v243_v42  ;;  %v244_v51 = vld [vmem:[%s3848_s2 + $0x6d0] sm:$0xff]  ;;  %v1927_v52 = vpack.c.bf16 %v257_v45, %v245_v44  ;;  %v267_v54 = vld [vmem:[%s3848_s2 + $0x788] sm:$0xff]  ;;  %v269_v56 = vld [vmem:[%s3848_s2 + $0x798] sm:$0xff]  ;;  %v1865_v58 = vpack.c.bf16 %v254_v50, %v242_v49 }
  0x2b   :  { %1916 = vmatprep.subr.bf16.mxu1 %v1915_v16  ;;  %v256_v53 = vld [vmem:[%s3848_s2 + $0x730] sm:$0xff]  ;;  %v279_v55 = vld [vmem:[%s3848_s2 + $0x7e8] sm:$0xff]  ;;  %v281_v57 = vld [vmem:[%s3848_s2 + $0x7f8] sm:$0xff] }
  0x2c   :  { %v1929_v59 = vpack.c.bf16 %v256_v53, %v244_v51  ;;  %v1867_v60 = vpack.c.bf16 %v279_v55, %v267_v54  ;;  %v266_v61 = vld [vmem:[%s3848_s2 + $0x780] sm:$0xff]  ;;  %v268_v63 = vld [vmem:[%s3848_s2 + $0x790] sm:$0xff]  ;;  %v1931_v0 = vpack.c.bf16 %v281_v57, %v269_v56  ;;  %v291_v2 = vld [vmem:[%s3848_s2 + $0x848] sm:$0xff] }
  0x2d   :  { %1854 = vmatpush1.bf16.msra.mxu0 %v1853_v22  ;;  %v278_v62 = vld [vmem:[%s3848_s2 + $0x7e0] sm:$0xff]  ;;  %v280_v1 = vld [vmem:[%s3848_s2 + $0x7f0] sm:$0xff]  ;;  %v303_v3 = vld [vmem:[%s3848_s2 + $0x8a8] sm:$0xff] }
  0x2e   :  { %1918 = vmatpush1.bf16.msra.mxu1 %v1917_v23  ;;  %1856 = vmatprep.subr.bf16.mxu0 %v1855_v24  ;;  %v293_v4 = vld [vmem:[%s3848_s2 + $0x858] sm:$0xff]  ;;  %v1869_v6 = vpack.c.bf16 %v278_v62, %v266_v61  ;;  %v290_v7 = vld [vmem:[%s3848_s2 + $0x840] sm:$0xff]  ;;  %v1933_v8 = vpack.c.bf16 %v280_v1, %v268_v63  ;;  %v1871_v9 = vpack.c.bf16 %v303_v3, %v291_v2  ;;  %v292_v11 = vld [vmem:[%s3848_s2 + $0x850] sm:$0xff] }
  0x2f   :  { %1920 = vmatprep.subr.bf16.mxu1 %v1919_v28  ;;  %v305_v5 = vld [vmem:[%s3848_s2 + $0x8b8] sm:$0xff]  ;;  %v302_v10 = vld [vmem:[%s3848_s2 + $0x8a0] sm:$0xff]  ;;  %v304_v12 = vld [vmem:[%s3848_s2 + $0x8b0] sm:$0xff] }
  0x30   :  { %v1935_v13 = vpack.c.bf16 %v305_v5, %v293_v4  ;;  %v315_v14 = vld [vmem:[%s3848_s2 + $0x908] sm:$0xff]  ;;  %v2590_v16 = vld.sshfl [vmem:[%s3847_s1] sm:$0x33 pattern:$0x76325410]  ;;  %v317_v17 = vld [vmem:[%s3848_s2 + $0x918] sm:$0xff]  ;;  %v1873_v20 = vpack.c.bf16 %v302_v10, %v290_v7  ;;  %v1937_v21 = vpack.c.bf16 %v304_v12, %v292_v11 }
  0x31   :  { %1858 = vmatpush1.bf16.msra.mxu0 %v1857_v34  ;;  %v327_v15 = vld [vmem:[%s3848_s2 + $0x968] sm:$0xff]  ;;  %v329_v18 = vld [vmem:[%s3848_s2 + $0x978] sm:$0xff]  ;;  %v2600_v19 = vcombine.high %v2590_v16, %v2590_v16  ;;  %v314_v23 = vld [vmem:[%s3848_s2 + $0x900] sm:$0xff] }
  0x32   :  { %1922 = vmatpush1.bf16.msra.mxu1 %v1921_v35  ;;  %1860 = vmatprep.subr.bf16.mxu0 %v1859_v36  ;;  %v1875_v22 = vpack.c.bf16 %v327_v15, %v315_v14  ;;  %v326_v24 = vld [vmem:[%s3848_s2 + $0x960] sm:$0xff]  ;;  %v316_v25 = vld [vmem:[%s3848_s2 + $0x910] sm:$0xff]  ;;  %v1939_v26 = vpack.c.bf16 %v329_v18, %v317_v17  ;;  %v339_v28 = vld [vmem:[%s3848_s2 + $0x9c8] sm:$0xff] }
  0x33   :  { %1924 = vmatprep.subr.bf16.mxu1 %v1923_v40  ;;  %v328_v27 = vld [vmem:[%s3848_s2 + $0x970] sm:$0xff]  ;;  %v351_v29 = vld [vmem:[%s3848_s2 + $0xa28] sm:$0xff]  ;;  %549 = vmatprep.mubr.f32.mxu0 %v2600_v19  ;;  %v341_v30 = vld [vmem:[%s3848_s2 + $0x9d8] sm:$0xff]  ;;  %v1877_v32 = vpack.c.bf16 %v326_v24, %v314_v23 }
  0x34   :  { %v353_v31 = vld [vmem:[%s3848_s2 + $0xa38] sm:$0xff]  ;;  %620 = vmatprep.mubr.f32.mxu1 %v2600_v19  ;;  %v1941_v33 = vpack.c.bf16 %v328_v27, %v316_v25  ;;  %v1879_v34 = vpack.c.bf16 %v351_v29, %v339_v28  ;;  %v338_v35 = vld [vmem:[%s3848_s2 + $0x9c0] sm:$0xff]  ;;  %v340_v37 = vld [vmem:[%s3848_s2 + $0x9d0] sm:$0xff] }
  0x35   :  { %1862 = vmatpush1.bf16.msra.mxu0 %v1861_v46  ;;  %v350_v36 = vld [vmem:[%s3848_s2 + $0xa20] sm:$0xff]  ;;  %v1943_v38 = vpack.c.bf16 %v353_v31, %v341_v30  ;;  %v352_v39 = vld [vmem:[%s3848_s2 + $0xa30] sm:$0xff]  ;;  %v363_v40 = vld [vmem:[%s3848_s2 + $0xa88] sm:$0xff] }
  0x36   :  { %1926 = vmatpush1.bf16.msra.mxu1 %v1925_v47  ;;  %1864 = vmatprep.subr.bf16.mxu0 %v1863_v48  ;;  %v375_v41 = vld [vmem:[%s3848_s2 + $0xae8] sm:$0xff]  ;;  %v365_v42 = vld [vmem:[%s3848_s2 + $0xa98] sm:$0xff]  ;;  %v1881_v44 = vpack.c.bf16 %v350_v36, %v338_v35  ;;  %v1945_v45 = vpack.c.bf16 %v352_v39, %v340_v37  ;;  %v362_v47 = vld [vmem:[%s3848_s2 + $0xa80] sm:$0xff] }
  0x37   :  { %1928 = vmatprep.subr.bf16.mxu1 %v1927_v52  ;;  %v377_v43 = vld [vmem:[%s3848_s2 + $0xaf8] sm:$0xff]  ;;  %v1883_v46 = vpack.c.bf16 %v375_v41, %v363_v40  ;;  %v374_v48 = vld [vmem:[%s3848_s2 + $0xae0] sm:$0xff]  ;;  %v364_v49 = vld [vmem:[%s3848_s2 + $0xa90] sm:$0xff] }
  0x38   :  { %v1947_v50 = vpack.c.bf16 %v377_v43, %v365_v42  ;;  %v376_v51 = vld [vmem:[%s3848_s2 + $0xaf0] sm:$0xff]  ;;  %v387_v52 = vld [vmem:[%s3848_s2 + $0xb48] sm:$0xff]  ;;  %v389_v54 = vld [vmem:[%s3848_s2 + $0xb58] sm:$0xff]  ;;  %v1885_v56 = vpack.c.bf16 %v374_v48, %v362_v47 }
  0x39   :  { %1866 = vmatpush1.bf16.msra.mxu0 %v1865_v58  ;;  %v399_v53 = vld [vmem:[%s3848_s2 + $0xba8] sm:$0xff]  ;;  %v401_v55 = vld [vmem:[%s3848_s2 + $0xbb8] sm:$0xff]  ;;  %v1949_v57 = vpack.c.bf16 %v376_v51, %v364_v49  ;;  %v388_v61 = vld [vmem:[%s3848_s2 + $0xb50] sm:$0xff] }
  0x3a   :  { %1930 = vmatpush1.bf16.msra.mxu1 %v1929_v59  ;;  %1868 = vmatprep.subr.bf16.mxu0 %v1867_v60  ;;  %v1887_v58 = vpack.c.bf16 %v399_v53, %v387_v52  ;;  %v386_v59 = vld [vmem:[%s3848_s2 + $0xb40] sm:$0xff]  ;;  %v1951_v62 = vpack.c.bf16 %v401_v55, %v389_v54  ;;  %v400_v63 = vld [vmem:[%s3848_s2 + $0xbb0] sm:$0xff]  ;;  %v43_v1 = vld [vmem:[%s3848_s2 + $0x88] sm:$0xff] }
  0x3b   :  { %1932 = vmatprep.subr.bf16.mxu1 %v1931_v0  ;;  %v398_v60 = vld [vmem:[%s3848_s2 + $0xba0] sm:$0xff]  ;;  %v31_v0 = vld [vmem:[%s3848_s2 + $0x28] sm:$0xff]  ;;  %v33_v2 = vld [vmem:[%s3848_s2 + $0x38] sm:$0xff]  ;;  %v1953_v5 = vpack.c.bf16 %v400_v63, %v388_v61 }
  0x3c   :  { %v45_v3 = vld [vmem:[%s3848_s2 + $0x98] sm:$0xff]  ;;  %v1889_v4 = vpack.c.bf16 %v398_v60, %v386_v59  ;;  %v30_v7 = vld [vmem:[%s3848_s2 + $0x20] sm:$0xff]  ;;  %v44_v11 = vld [vmem:[%s3848_s2 + $0x90] sm:$0xff] }
  0x3d   :  { %1870 = vmatpush1.bf16.msra.mxu0 %v1869_v6  ;;  %v1955_v6 = vpack.c.bf16 %v43_v1, %v31_v0  ;;  %v2019_v10 = vpack.c.bf16 %v45_v3, %v33_v2  ;;  %v55_v12 = vld [vmem:[%s3848_s2 + $0xe8] sm:$0xff]  ;;  %v57_v14 = vld [vmem:[%s3848_s2 + $0xf8] sm:$0xff]  ;;  %v56_v23 = vld [vmem:[%s3848_s2 + $0xf0] sm:$0xff] }
  0x3e   :  { %1934 = vmatpush1.bf16.msra.mxu1 %v1933_v8  ;;  %1872 = vmatprep.subr.bf16.mxu0 %v1871_v9  ;;  %v42_v8 = vld [vmem:[%s3848_s2 + $0x80] sm:$0xff]  ;;  %v32_v9 = vld [vmem:[%s3848_s2 + $0x30] sm:$0xff]  ;;  %v69_v15 = vld [vmem:[%s3848_s2 + $0x158] sm:$0xff] }
  0x3f   :  { %1936 = vmatprep.subr.bf16.mxu1 %v1935_v13  ;;  %v67_v13 = vld [vmem:[%s3848_s2 + $0x148] sm:$0xff]  ;;  %v1957_v17 = vpack.c.bf16 %v42_v8, %v30_v7  ;;  %v2021_v18 = vpack.c.bf16 %v44_v11, %v32_v9  ;;  %v2023_v24 = vpack.c.bf16 %v69_v15, %v57_v14  ;;  %v68_v25 = vld [vmem:[%s3848_s2 + $0x150] sm:$0xff]  ;;  %v81_v28 = vld [vmem:[%s3848_s2 + $0x1b8] sm:$0xff] }
  0x40   :  { %v91_v27 = vld [vmem:[%s3848_s2 + $0x208] sm:$0xff]  ;;  %v93_v29 = vld [vmem:[%s3848_s2 + $0x218] sm:$0xff]  ;;  %v2025_v31 = vpack.c.bf16 %v68_v25, %v56_v23  ;;  %v80_v35 = vld [vmem:[%s3848_s2 + $0x1b0] sm:$0xff] }
  0x41   :  { %1874 = vmatpush1.bf16.msra.mxu0 %v1873_v20  ;;  %v1959_v20 = vpack.c.bf16 %v67_v13, %v55_v12  ;;  %v2027_v36 = vpack.c.bf16 %v93_v29, %v81_v28  ;;  %v92_v37 = vld [vmem:[%s3848_s2 + $0x210] sm:$0xff]  ;;  %v115_v39 = vld [vmem:[%s3848_s2 + $0x2c8] sm:$0xff]  ;;  %v105_v40 = vld [vmem:[%s3848_s2 + $0x278] sm:$0xff] }
  0x42   :  { %1938 = vmatpush1.bf16.msra.mxu1 %v1937_v21  ;;  %1876 = vmatprep.subr.bf16.mxu0 %v1875_v22  ;;  %v54_v21 = vld [vmem:[%s3848_s2 + $0xe0] sm:$0xff]  ;;  %v117_v41 = vld [vmem:[%s3848_s2 + $0x2d8] sm:$0xff]  ;;  %v2029_v43 = vpack.c.bf16 %v92_v37, %v80_v35  ;;  %v104_v47 = vld [vmem:[%s3848_s2 + $0x270] sm:$0xff] }
  0x43   :  { %1940 = vmatprep.subr.bf16.mxu1 %v1939_v26  ;;  %v66_v22 = vld [vmem:[%s3848_s2 + $0x140] sm:$0xff]  ;;  %v79_v26 = vld [vmem:[%s3848_s2 + $0x1a8] sm:$0xff]  ;;  %v2031_v48 = vpack.c.bf16 %v117_v41, %v105_v40  ;;  %v116_v49 = vld [vmem:[%s3848_s2 + $0x2d0] sm:$0xff] }
  0x44   :  { %v1961_v30 = vpack.c.bf16 %v66_v22, %v54_v21  ;;  %v139_v51 = vld [vmem:[%s3848_s2 + $0x388] sm:$0xff]  ;;  %v129_v52 = vld [vmem:[%s3848_s2 + $0x338] sm:$0xff]  ;;  %v2033_v55 = vpack.c.bf16 %v116_v49, %v104_v47  ;;  %v128_v59 = vld [vmem:[%s3848_s2 + $0x330] sm:$0xff] }
  0x45   :  { %1878 = vmatpush1.bf16.msra.mxu0 %v1877_v32  ;;  %v1963_v32 = vpack.c.bf16 %v91_v27, %v79_v26  ;;  %v141_v53 = vld [vmem:[%s3848_s2 + $0x398] sm:$0xff]  ;;  %v140_v61 = vld [vmem:[%s3848_s2 + $0x390] sm:$0xff]  ;;  %v163_v63 = vld [vmem:[%s3848_s2 + $0x448] sm:$0xff] }
  0x46   :  { %1942 = vmatpush1.bf16.msra.mxu1 %v1941_v33  ;;  %1880 = vmatprep.subr.bf16.mxu0 %v1879_v34  ;;  %v78_v33 = vld [vmem:[%s3848_s2 + $0x1a0] sm:$0xff]  ;;  %v2035_v60 = vpack.c.bf16 %v141_v53, %v129_v52  ;;  %v153_v0 = vld [vmem:[%s3848_s2 + $0x3f8] sm:$0xff]  ;;  %v2037_v3 = vpack.c.bf16 %v140_v61, %v128_v59  ;;  %v152_v7 = vld [vmem:[%s3848_s2 + $0x3f0] sm:$0xff] }
  0x47   :  { %1944 = vmatprep.subr.bf16.mxu1 %v1943_v38  ;;  %v90_v34 = vld [vmem:[%s3848_s2 + $0x200] sm:$0xff]  ;;  %v103_v38 = vld [vmem:[%s3848_s2 + $0x268] sm:$0xff]  ;;  %v165_v1 = vld [vmem:[%s3848_s2 + $0x458] sm:$0xff] }
  0x48   :  { %v1965_v42 = vpack.c.bf16 %v90_v34, %v78_v33  ;;  %v2039_v8 = vpack.c.bf16 %v165_v1, %v153_v0  ;;  %v164_v9 = vld [vmem:[%s3848_s2 + $0x450] sm:$0xff]  ;;  %v187_v11 = vld [vmem:[%s3848_s2 + $0x508] sm:$0xff]  ;;  %v177_v12 = vld [vmem:[%s3848_s2 + $0x4b8] sm:$0xff] }
  0x49   :  { %1882 = vmatpush1.bf16.msra.mxu0 %v1881_v44  ;;  %v1967_v44 = vpack.c.bf16 %v115_v39, %v103_v38  ;;  %v189_v13 = vld [vmem:[%s3848_s2 + $0x518] sm:$0xff]  ;;  %v2041_v15 = vpack.c.bf16 %v164_v9, %v152_v7  ;;  %v176_v21 = vld [vmem:[%s3848_s2 + $0x4b0] sm:$0xff]  ;;  %v211_v25 = vld [vmem:[%s3848_s2 + $0x5c8] sm:$0xff] }
  0x4a   :  { %1946 = vmatpush1.bf16.msra.mxu1 %v1945_v45  ;;  %1884 = vmatprep.subr.bf16.mxu0 %v1883_v46  ;;  %v102_v45 = vld [vmem:[%s3848_s2 + $0x260] sm:$0xff]  ;;  %v2043_v22 = vpack.c.bf16 %v189_v13, %v177_v12  ;;  %v188_v23 = vld [vmem:[%s3848_s2 + $0x510] sm:$0xff]  ;;  %v201_v26 = vld [vmem:[%s3848_s2 + $0x578] sm:$0xff] }
  0x4b   :  { %1948 = vmatprep.subr.bf16.mxu1 %v1947_v50  ;;  %v114_v46 = vld [vmem:[%s3848_s2 + $0x2c0] sm:$0xff]  ;;  %v127_v50 = vld [vmem:[%s3848_s2 + $0x328] sm:$0xff]  ;;  %v213_v27 = vld [vmem:[%s3848_s2 + $0x5d8] sm:$0xff]  ;;  %v2045_v29 = vpack.c.bf16 %v188_v23, %v176_v21 }
  0x4c   :  { %v1969_v54 = vpack.c.bf16 %v114_v46, %v102_v45  ;;  %v200_v33 = vld [vmem:[%s3848_s2 + $0x570] sm:$0xff]  ;;  %v2047_v34 = vpack.c.bf16 %v213_v27, %v201_v26  ;;  %v235_v37 = vld [vmem:[%s3848_s2 + $0x688] sm:$0xff]  ;;  %v225_v38 = vld [vmem:[%s3848_s2 + $0x638] sm:$0xff] }
  0x4d   :  { %1886 = vmatpush1.bf16.msra.mxu0 %v1885_v56  ;;  %v1971_v56 = vpack.c.bf16 %v139_v51, %v127_v50  ;;  %v212_v35 = vld [vmem:[%s3848_s2 + $0x5d0] sm:$0xff]  ;;  %v237_v39 = vld [vmem:[%s3848_s2 + $0x698] sm:$0xff]  ;;  %v259_v49 = vld [vmem:[%s3848_s2 + $0x748] sm:$0xff] }
  0x4e   :  { %1950 = vmatpush1.bf16.msra.mxu1 %v1949_v57  ;;  %1888 = vmatprep.subr.bf16.mxu0 %v1887_v58  ;;  %v126_v57 = vld [vmem:[%s3848_s2 + $0x320] sm:$0xff]  ;;  %v2049_v41 = vpack.c.bf16 %v212_v35, %v200_v33  ;;  %v224_v45 = vld [vmem:[%s3848_s2 + $0x630] sm:$0xff]  ;;  %v2051_v46 = vpack.c.bf16 %v237_v39, %v225_v38  ;;  %v249_v50 = vld [vmem:[%s3848_s2 + $0x6f8] sm:$0xff] }
  0x4f   :  { %1952 = vmatprep.subr.bf16.mxu1 %v1951_v62  ;;  %v138_v58 = vld [vmem:[%s3848_s2 + $0x380] sm:$0xff]  ;;  %v151_v62 = vld [vmem:[%s3848_s2 + $0x3e8] sm:$0xff]  ;;  %v236_v47 = vld [vmem:[%s3848_s2 + $0x690] sm:$0xff] }
  0x50   :  { %v1973_v2 = vpack.c.bf16 %v138_v58, %v126_v57  ;;  %v261_v51 = vld [vmem:[%s3848_s2 + $0x758] sm:$0xff]  ;;  %v2053_v53 = vpack.c.bf16 %v236_v47, %v224_v45  ;;  %v248_v57 = vld [vmem:[%s3848_s2 + $0x6f0] sm:$0xff]  ;;  %v283_v61 = vld [vmem:[%s3848_s2 + $0x808] sm:$0xff] }
  0x51   :  { %1890 = vmatpush1.bf16.msra.mxu0 %v1889_v4  ;;  %v1975_v4 = vpack.c.bf16 %v163_v63, %v151_v62  ;;  %v2055_v58 = vpack.c.bf16 %v261_v51, %v249_v50  ;;  %v260_v59 = vld [vmem:[%s3848_s2 + $0x750] sm:$0xff]  ;;  %v273_v62 = vld [vmem:[%s3848_s2 + $0x7b8] sm:$0xff]  ;;  %v307_v9 = vld [vmem:[%s3848_s2 + $0x8c8] sm:$0xff] }
  0x52   :  { %1954 = vmatpush1.bf16.msra.mxu1 %v1953_v5  ;;  %1956 = vmatprep.subr.bf16.mxu0 %v1955_v6  ;;  %v150_v5 = vld [vmem:[%s3848_s2 + $0x3e0] sm:$0xff]  ;;  %v285_v63 = vld [vmem:[%s3848_s2 + $0x818] sm:$0xff]  ;;  %v2057_v1 = vpack.c.bf16 %v260_v59, %v248_v57  ;;  %v284_v7 = vld [vmem:[%s3848_s2 + $0x810] sm:$0xff] }
  0x53   :  { %2020 = vmatprep.subr.bf16.mxu1 %v2019_v10  ;;  %v162_v6 = vld [vmem:[%s3848_s2 + $0x440] sm:$0xff]  ;;  %v175_v10 = vld [vmem:[%s3848_s2 + $0x4a8] sm:$0xff]  ;;  %v308_v21 = vld [vmem:[%s3848_s2 + $0x8d0] sm:$0xff] }
  0x54   :  { %550 = vmatmul.mubr.f32.vlgmr.msra.gmra.mrb[0].mxu0 %v2590_v16  ;;  %v1977_v14 = vpack.c.bf16 %v162_v6, %v150_v5  ;;  %v272_v5 = vld [vmem:[%s3848_s2 + $0x7b0] sm:$0xff]  ;;  %v2059_v6 = vpack.c.bf16 %v285_v63, %v273_v62  ;;  %v331_v23 = vld [vmem:[%s3848_s2 + $0x988] sm:$0xff] }
  0x55   :  { %621 = vmatmul.mubr.f32.vlgmr.msra.gmra.mrb[0].mxu1 %v2590_v16  ;;  %1958 = vmatpush1.bf16.msra.mxu0 %v1957_v17  ;;  %v1979_v17 = vpack.c.bf16 %v187_v11, %v175_v10  ;;  %v297_v10 = vld [vmem:[%s3848_s2 + $0x878] sm:$0xff]  ;;  %v2061_v13 = vpack.c.bf16 %v284_v7, %v272_v5  ;;  %v332_v33 = vld [vmem:[%s3848_s2 + $0x990] sm:$0xff]  ;;  %v355_v35 = vld [vmem:[%s3848_s2 + $0xa48] sm:$0xff] }
  0x56   :  { %2022 = vmatpush1.bf16.msra.mxu1 %v2021_v18  ;;  %1960 = vmatprep.subr.bf16.mxu0 %v1959_v20  ;;  %v174_v18 = vld [vmem:[%s3848_s2 + $0x4a0] sm:$0xff]  ;;  %v309_v11 = vld [vmem:[%s3848_s2 + $0x8d8] sm:$0xff]  ;;  %v356_v45 = vld [vmem:[%s3848_s2 + $0xa50] sm:$0xff] }
  0x57   :  { %2024 = vmatprep.subr.bf16.mxu1 %v2023_v24  ;;  %691 = vmatprep.mubr.f32.mxu0 %v2600_v19  ;;  %v186_v20 = vld [vmem:[%s3848_s2 + $0x500] sm:$0xff]  ;;  %v199_v24 = vld [vmem:[%s3848_s2 + $0x568] sm:$0xff]  ;;  %v380_v57 = vld [vmem:[%s3848_s2 + $0xb10] sm:$0xff] }
  0x58   :  { %762 = vmatprep.mubr.f32.mxu1 %v2600_v19  ;;  %v1981_v28 = vpack.c.bf16 %v186_v20, %v174_v18  ;;  %v296_v18 = vld [vmem:[%s3848_s2 + $0x870] sm:$0xff]  ;;  %v2063_v20 = vpack.c.bf16 %v309_v11, %v297_v10  ;;  %v379_v47 = vld [vmem:[%s3848_s2 + $0xb08] sm:$0xff] }
  0x59   :  { %1962 = vmatpush1.bf16.msra.mxu0 %v1961_v30  ;;  %v1983_v30 = vpack.c.bf16 %v211_v25, %v199_v24  ;;  %v321_v24 = vld [vmem:[%s3848_s2 + $0x938] sm:$0xff]  ;;  %v2065_v27 = vpack.c.bf16 %v308_v21, %v296_v18  ;;  %v403_v59 = vld [vmem:[%s3848_s2 + $0xbc8] sm:$0xff]  ;;  %v404_v5 = vld [vmem:[%s3848_s2 + $0xbd0] sm:$0xff] }
  0x5a   :  { %2026 = vmatpush1.bf16.msra.mxu1 %v2025_v31  ;;  %1964 = vmatprep.subr.bf16.mxu0 %v1963_v32  ;;  %v198_v31 = vld [vmem:[%s3848_s2 + $0x560] sm:$0xff]  ;;  %v333_v25 = vld [vmem:[%s3848_s2 + $0x998] sm:$0xff]  ;;  %v47_v7 = vld [vmem:[%s3848_s2 + $0xa8] sm:$0xff] }
  0x5b   :  { %2028 = vmatprep.subr.bf16.mxu1 %v2027_v36  ;;  %v210_v32 = vld [vmem:[%s3848_s2 + $0x5c0] sm:$0xff]  ;;  %v223_v36 = vld [vmem:[%s3848_s2 + $0x628] sm:$0xff]  ;;  %v48_v18 = vld [vmem:[%s3848_s2 + $0xb0] sm:$0xff] }
  0x5c   :  { %v1985_v40 = vpack.c.bf16 %v210_v32, %v198_v31  ;;  %v320_v31 = vld [vmem:[%s3848_s2 + $0x930] sm:$0xff]  ;;  %v2067_v32 = vpack.c.bf16 %v333_v25, %v321_v24  ;;  %v71_v21 = vld [vmem:[%s3848_s2 + $0x168] sm:$0xff] }
  0x5d   :  { %1966 = vmatpush1.bf16.msra.mxu0 %v1965_v42  ;;  %v1987_v42 = vpack.c.bf16 %v235_v37, %v223_v36  ;;  %v345_v36 = vld [vmem:[%s3848_s2 + $0x9f8] sm:$0xff]  ;;  %v2069_v39 = vpack.c.bf16 %v332_v33, %v320_v31 }
  0x5e   :  { %2030 = vmatpush1.bf16.msra.mxu1 %v2029_v43  ;;  %1968 = vmatprep.subr.bf16.mxu0 %v1967_v44  ;;  %v222_v43 = vld [vmem:[%s3848_s2 + $0x620] sm:$0xff]  ;;  %v357_v37 = vld [vmem:[%s3848_s2 + $0xa58] sm:$0xff] }
  0x5f   :  { %2032 = vmatprep.subr.bf16.mxu1 %v2031_v48  ;;  %v234_v44 = vld [vmem:[%s3848_s2 + $0x680] sm:$0xff]  ;;  %v247_v48 = vld [vmem:[%s3848_s2 + $0x6e8] sm:$0xff] }
  0x60   :  { %v1989_v52 = vpack.c.bf16 %v234_v44, %v222_v43  ;;  %v344_v43 = vld [vmem:[%s3848_s2 + $0x9f0] sm:$0xff]  ;;  %v2071_v44 = vpack.c.bf16 %v357_v37, %v345_v36 }
  0x61   :  { %1970 = vmatpush1.bf16.msra.mxu0 %v1969_v54  ;;  %v1991_v54 = vpack.c.bf16 %v259_v49, %v247_v48  ;;  %v369_v48 = vld [vmem:[%s3848_s2 + $0xab8] sm:$0xff]  ;;  %v2073_v51 = vpack.c.bf16 %v356_v45, %v344_v43 }
  0x62   :  { %2034 = vmatpush1.bf16.msra.mxu1 %v2033_v55  ;;  %1972 = vmatprep.subr.bf16.mxu0 %v1971_v56  ;;  %v246_v55 = vld [vmem:[%s3848_s2 + $0x6e0] sm:$0xff]  ;;  %v381_v49 = vld [vmem:[%s3848_s2 + $0xb18] sm:$0xff] }
  0x63   :  { %2036 = vmatprep.subr.bf16.mxu1 %v2035_v60  ;;  %v258_v56 = vld [vmem:[%s3848_s2 + $0x740] sm:$0xff]  ;;  %v271_v60 = vld [vmem:[%s3848_s2 + $0x7a8] sm:$0xff] }
  0x64   :  { %v1993_v0 = vpack.c.bf16 %v258_v56, %v246_v55  ;;  %v368_v55 = vld [vmem:[%s3848_s2 + $0xab0] sm:$0xff]  ;;  %v2075_v56 = vpack.c.bf16 %v381_v49, %v369_v48 }
  0x65   :  { %1974 = vmatpush1.bf16.msra.mxu0 %v1973_v2  ;;  %v1995_v2 = vpack.c.bf16 %v283_v61, %v271_v60  ;;  %v393_v60 = vld [vmem:[%s3848_s2 + $0xb78] sm:$0xff]  ;;  %v2077_v63 = vpack.c.bf16 %v380_v57, %v368_v55 }
  0x66   :  { %2038 = vmatpush1.bf16.msra.mxu1 %v2037_v3  ;;  %1976 = vmatprep.subr.bf16.mxu0 %v1975_v4  ;;  %v270_v3 = vld [vmem:[%s3848_s2 + $0x7a0] sm:$0xff]  ;;  %v405_v61 = vld [vmem:[%s3848_s2 + $0xbd8] sm:$0xff] }
  0x67   :  { %2040 = vmatprep.subr.bf16.mxu1 %v2039_v8  ;;  %v282_v4 = vld [vmem:[%s3848_s2 + $0x800] sm:$0xff]  ;;  %v295_v8 = vld [vmem:[%s3848_s2 + $0x868] sm:$0xff] }
  0x68   :  { %v1997_v12 = vpack.c.bf16 %v282_v4, %v270_v3  ;;  %v392_v3 = vld [vmem:[%s3848_s2 + $0xb70] sm:$0xff]  ;;  %v2079_v4 = vpack.c.bf16 %v405_v61, %v393_v60 }
  0x69   :  { %1978 = vmatpush1.bf16.msra.mxu0 %v1977_v14  ;;  %v1999_v14 = vpack.c.bf16 %v307_v9, %v295_v8  ;;  %v37_v8 = vld [vmem:[%s3848_s2 + $0x58] sm:$0xff]  ;;  %v2081_v11 = vpack.c.bf16 %v404_v5, %v392_v3 }
  0x6a   :  { %2042 = vmatpush1.bf16.msra.mxu1 %v2041_v15  ;;  %1980 = vmatprep.subr.bf16.mxu0 %v1979_v17  ;;  %v294_v15 = vld [vmem:[%s3848_s2 + $0x860] sm:$0xff]  ;;  %v49_v9 = vld [vmem:[%s3848_s2 + $0xb8] sm:$0xff] }
  0x6b   :  { %2044 = vmatprep.subr.bf16.mxu1 %v2043_v22  ;;  %v306_v17 = vld [vmem:[%s3848_s2 + $0x8c0] sm:$0xff]  ;;  %v319_v22 = vld [vmem:[%s3848_s2 + $0x928] sm:$0xff] }
  0x6c   :  { %v2001_v26 = vpack.c.bf16 %v306_v17, %v294_v15  ;;  %v36_v15 = vld [vmem:[%s3848_s2 + $0x50] sm:$0xff]  ;;  %v2147_v17 = vpack.c.bf16 %v49_v9, %v37_v8 }
  0x6d   :  { %1982 = vmatpush1.bf16.msra.mxu0 %v1981_v28  ;;  %v2003_v28 = vpack.c.bf16 %v331_v23, %v319_v22  ;;  %v61_v22 = vld [vmem:[%s3848_s2 + $0x118] sm:$0xff] }
  0x6e   :  { %2046 = vmatpush1.bf16.msra.mxu1 %v2045_v29  ;;  %1984 = vmatprep.subr.bf16.mxu0 %v1983_v30  ;;  %v318_v29 = vld [vmem:[%s3848_s2 + $0x920] sm:$0xff]  ;;  %v73_v23 = vld [vmem:[%s3848_s2 + $0x178] sm:$0xff] }
  0x6f   :  { %2048 = vmatprep.subr.bf16.mxu1 %v2047_v34  ;;  %v330_v30 = vld [vmem:[%s3848_s2 + $0x980] sm:$0xff]  ;;  %v343_v34 = vld [vmem:[%s3848_s2 + $0x9e8] sm:$0xff] }
  0x70   :  { %v2005_v38 = vpack.c.bf16 %v330_v30, %v318_v29 }
  0x71   :  { %1986 = vmatpush1.bf16.msra.mxu0 %v1985_v40  ;;  %v2007_v40 = vpack.c.bf16 %v355_v35, %v343_v34 }
  0x72   :  { %2050 = vmatpush1.bf16.msra.mxu1 %v2049_v41  ;;  %1988 = vmatprep.subr.bf16.mxu0 %v1987_v42  ;;  %v342_v41 = vld [vmem:[%s3848_s2 + $0x9e0] sm:$0xff] }
  0x73   :  { %2052 = vmatprep.subr.bf16.mxu1 %v2051_v46  ;;  %v354_v42 = vld [vmem:[%s3848_s2 + $0xa40] sm:$0xff]  ;;  %v367_v46 = vld [vmem:[%s3848_s2 + $0xaa8] sm:$0xff] }
  0x74   :  { %v2009_v50 = vpack.c.bf16 %v354_v42, %v342_v41 }
  0x75   :  { %1990 = vmatpush1.bf16.msra.mxu0 %v1989_v52  ;;  %v2011_v52 = vpack.c.bf16 %v379_v47, %v367_v46 }
  0x76   :  { %2054 = vmatpush1.bf16.msra.mxu1 %v2053_v53  ;;  %1992 = vmatprep.subr.bf16.mxu0 %v1991_v54  ;;  %v366_v53 = vld [vmem:[%s3848_s2 + $0xaa0] sm:$0xff] }
  0x77   :  { %2056 = vmatprep.subr.bf16.mxu1 %v2055_v58  ;;  %v378_v54 = vld [vmem:[%s3848_s2 + $0xb00] sm:$0xff]  ;;  %v391_v58 = vld [vmem:[%s3848_s2 + $0xb68] sm:$0xff] }
  0x78   :  { %v2013_v62 = vpack.c.bf16 %v378_v54, %v366_v53 }
  0x79   :  { %1994 = vmatpush1.bf16.msra.mxu0 %v1993_v0  ;;  %v2015_v0 = vpack.c.bf16 %v403_v59, %v391_v58 }
  0x7a   :  { %2058 = vmatpush1.bf16.msra.mxu1 %v2057_v1  ;;  %1996 = vmatprep.subr.bf16.mxu0 %v1995_v2  ;;  %v390_v1 = vld [vmem:[%s3848_s2 + $0xb60] sm:$0xff] }
  0x7b   :  { %2060 = vmatprep.subr.bf16.mxu1 %v2059_v6  ;;  %v402_v2 = vld [vmem:[%s3848_s2 + $0xbc0] sm:$0xff]  ;;  %v35_v6 = vld [vmem:[%s3848_s2 + $0x48] sm:$0xff] }
  0x7c   :  { %v2017_v10 = vpack.c.bf16 %v402_v2, %v390_v1 }
  0x7d   :  { %1998 = vmatpush1.bf16.msra.mxu0 %v1997_v12  ;;  %v2083_v12 = vpack.c.bf16 %v47_v7, %v35_v6 }
  0x7e   :  { %2062 = vmatpush1.bf16.msra.mxu1 %v2061_v13  ;;  %2000 = vmatprep.subr.bf16.mxu0 %v1999_v14  ;;  %v34_v13 = vld [vmem:[%s3848_s2 + $0x40] sm:$0xff] }
  0x7f   :  { %2064 = vmatprep.subr.bf16.mxu1 %v2063_v20  ;;  %v46_v14 = vld [vmem:[%s3848_s2 + $0xa0] sm:$0xff]  ;;  %v59_v20 = vld [vmem:[%s3848_s2 + $0x108] sm:$0xff] }
  0x80   :  { %v2085_v24 = vpack.c.bf16 %v46_v14, %v34_v13 }
  0x81   :  { %2002 = vmatpush1.bf16.msra.mxu0 %v2001_v26 }
  0x82   :  { %2066 = vmatpush1.bf16.msra.mxu1 %v2065_v27  ;;  %2004 = vmatprep.subr.bf16.mxu0 %v2003_v28 }
  0x83   :  { %2068 = vmatprep.subr.bf16.mxu1 %v2067_v32 }
  0x85   :  { %2006 = vmatpush1.bf16.msra.mxu0 %v2005_v38 }
  0x86   :  { %2070 = vmatpush1.bf16.msra.mxu1 %v2069_v39  ;;  %2008 = vmatprep.subr.bf16.mxu0 %v2007_v40 }
  0x87   :  { %2072 = vmatprep.subr.bf16.mxu1 %v2071_v44 }
  0x89   :  { %2010 = vmatpush1.bf16.msra.mxu0 %v2009_v50 }
  0x8a   :  { %2074 = vmatpush1.bf16.msra.mxu1 %v2073_v51  ;;  %2012 = vmatprep.subr.bf16.mxu0 %v2011_v52 }
  0x8b   :  { %2076 = vmatprep.subr.bf16.mxu1 %v2075_v56 }
  0x8d   :  { %2014 = vmatpush1.bf16.msra.mxu0 %v2013_v62 }
  0x8e   :  { %2078 = vmatpush1.bf16.msra.mxu1 %v2077_v63  ;;  %2016 = vmatprep.subr.bf16.mxu0 %v2015_v0 }
  0x8f   :  { %2080 = vmatprep.subr.bf16.mxu1 %v2079_v4 }
  0x91   :  { %2018 = vmatpush1.bf16.msra.mxu0 %v2017_v10 }
  0x92   :  { %16 = vsyncpa [#allocation5], 0  ;;  %2082 = vmatpush1.bf16.msra.mxu1 %v2081_v11  ;;  %2084 = vmatprep.subr.bf16.mxu0 %v2083_v12  ;;  %v2149_v25 = vpack.c.bf16 %v48_v18, %v36_v15  ;;  %v2087_v26 = vpack.c.bf16 %v71_v21, %v59_v20  ;;  %v58_v27 = vld [vmem:[%s3848_s2 + $0x100] sm:$0xff]  ;;  %v60_v29 = vld [vmem:[%s3848_s2 + $0x110] sm:$0xff]  ;;  %v2151_v30 = vpack.c.bf16 %v73_v23, %v61_v22  ;;  %s911_s15 = sld [smem:[#allocation3]]  ;;  %s1660_s16 = sld [smem:[#allocation3 + $0x1]] }
  0x93   :  { %v70_v28 = vld [vmem:[%s3848_s2 + $0x160] sm:$0xff]  ;;  %2148 = vmatprep.subr.bf16.mxu1 %v2147_v17  ;;  %v72_v31 = vld [vmem:[%s3848_s2 + $0x170] sm:$0xff]  ;;  %v83_v32 = vld [vmem:[%s3848_s2 + $0x1c8] sm:$0xff]  ;;  %s3469_s18 = sld [smem:[#allocation3 + $0x3]]  ;;  %s3475_s19 = sld [smem:[#allocation3 + $0x5]] }
  0x94   :  { %v95_v33 = vld [vmem:[%s3848_s2 + $0x228] sm:$0xff]  ;;  %692 = vmatmul.mubr.f32.vlgmr.msra.gmra.mrb[2].mxu0 %v2590_v16  ;;  %v85_v34 = vld [vmem:[%s3848_s2 + $0x1d8] sm:$0xff]  ;;  %v2089_v36 = vpack.c.bf16 %v70_v28, %v58_v27  ;;  %v2153_v37 = vpack.c.bf16 %v72_v31, %v60_v29  ;;  %v82_v39 = vld [vmem:[%s3848_s2 + $0x1c0] sm:$0xff]  ;;  %s3480_s21 = sld [smem:[#allocation3 + $0x6]]  ;;  %s3483_s22 = sld [smem:[#allocation3 + $0x7]] }
  0x95   :  { %v97_v35 = vld [vmem:[%s3848_s2 + $0x238] sm:$0xff]  ;;  %763 = vmatmul.mubr.f32.vlgmr.msra.gmra.mrb[2].mxu1 %v2590_v16  ;;  %2086 = vmatpush1.bf16.msra.mxu0 %v2085_v24  ;;  %v2091_v38 = vpack.c.bf16 %v95_v33, %v83_v32  ;;  %v94_v40 = vld [vmem:[%s3848_s2 + $0x220] sm:$0xff]  ;;  %v84_v41 = vld [vmem:[%s3848_s2 + $0x1d0] sm:$0xff]  ;;  %s3486_s23 = sld [smem:[#allocation3 + $0x80]]  ;;  %s3523_s8 = sld [smem:[#allocation3 + $0x81]] }
  0x96   :  { %2150 = vmatpush1.bf16.msra.mxu1 %v2149_v25  ;;  %2088 = vmatprep.subr.bf16.mxu0 %v2087_v26  ;;  %v2155_v16 = vpack.c.bf16 %v97_v35, %v85_v34  ;;  %v96_v42 = vld [vmem:[%s3848_s2 + $0x230] sm:$0xff]  ;;  %v107_v43 = vld [vmem:[%s3848_s2 + $0x288] sm:$0xff]  ;;  %v109_v45 = vld [vmem:[%s3848_s2 + $0x298] sm:$0xff]  ;;  %v2093_v47 = vpack.c.bf16 %v94_v40, %v82_v39  ;;  %s3525_s9 = sld [smem:[#allocation3 + $0x82]] }
  0x97   :  { %2152 = vmatprep.subr.bf16.mxu1 %v2151_v30  ;;  %v119_v44 = vld [vmem:[%s3848_s2 + $0x2e8] sm:$0xff]  ;;  %833 = vmatprep.mubr.f32.mxu0 %v2600_v19  ;;  %v121_v46 = vld [vmem:[%s3848_s2 + $0x2f8] sm:$0xff]  ;;  %v2157_v48 = vpack.c.bf16 %v96_v42, %v84_v41  ;;  %v106_v50 = vld [vmem:[%s3848_s2 + $0x280] sm:$0xff] }
  0x98   :  { %904 = vmatprep.mubr.f32.mxu1 %v2600_v19  ;;  %v2095_v49 = vpack.c.bf16 %v119_v44, %v107_v43  ;;  %v118_v51 = vld [vmem:[%s3848_s2 + $0x2e0] sm:$0xff]  ;;  %v108_v52 = vld [vmem:[%s3848_s2 + $0x290] sm:$0xff]  ;;  %v2159_v19 = vpack.c.bf16 %v121_v46, %v109_v45  ;;  %v131_v54 = vld [vmem:[%s3848_s2 + $0x348] sm:$0xff]  ;;  %p912_p5 = scmp.gt.s32.totalorder %s911_s15, 0  ;;  %p1031_p6 = scmp.gt.s32.totalorder %s1660_s16, 0 }
  0x99   :  { %2090 = vmatpush1.bf16.msra.mxu0 %v2089_v36  ;;  %v120_v53 = vld [vmem:[%s3848_s2 + $0x2f0] sm:$0xff]  ;;  %v143_v55 = vld [vmem:[%s3848_s2 + $0x3a8] sm:$0xff]  ;;  %v133_v56 = vld [vmem:[%s3848_s2 + $0x358] sm:$0xff]  ;;  %v2097_v58 = vpack.c.bf16 %v118_v51, %v106_v50  ;;  %p1652_p7 = scmp.lt.s32.totalorder %s911_s15, 383  ;;  %p1661_p8 = scmp.lt.s32.totalorder %s1660_s16, 383 }
  0x9a   :  { %2154 = vmatpush1.bf16.msra.mxu1 %v2153_v37  ;;  %2092 = vmatprep.subr.bf16.mxu0 %v2091_v38  ;;  %v145_v57 = vld [vmem:[%s3848_s2 + $0x3b8] sm:$0xff]  ;;  %v2161_v59 = vpack.c.bf16 %v120_v53, %v108_v52  ;;  %v2099_v60 = vpack.c.bf16 %v143_v55, %v131_v54  ;;  %v130_v61 = vld [vmem:[%s3848_s2 + $0x340] sm:$0xff]  ;;  %v132_v63 = vld [vmem:[%s3848_s2 + $0x350] sm:$0xff]  ;;  %s913_s17 = scalar_select %p912_p5, %s911_s15, 0 }
  0x9b   :  { %2156 = vmatprep.subr.bf16.mxu1 %v2155_v16  ;;  %v142_v62 = vld [vmem:[%s3848_s2 + $0x3a0] sm:$0xff]  ;;  %v2163_v0 = vpack.c.bf16 %v145_v57, %v133_v56  ;;  %v144_v1 = vld [vmem:[%s3848_s2 + $0x3b0] sm:$0xff]  ;;  %v155_v2 = vld [vmem:[%s3848_s2 + $0x408] sm:$0xff]  ;;  %s3861_s16 = smov (!%p1031_p6, %s1660_s16), 0  ;;  %p1089_p10 = scmp.gt.s32.totalorder %s3469_s18, 0 }
  0x9c   :  { %v167_v3 = vld [vmem:[%s3848_s2 + $0x468] sm:$0xff]  ;;  %v157_v4 = vld [vmem:[%s3848_s2 + $0x418] sm:$0xff]  ;;  %v2101_v6 = vpack.c.bf16 %v142_v62, %v130_v61  ;;  %v2165_v7 = vpack.c.bf16 %v144_v1, %v132_v63  ;;  %v154_v9 = vld [vmem:[%s3848_s2 + $0x400] sm:$0xff]  ;;  %s3863_s17 = smov (!%p1652_p7, %s913_s17), 383  ;;  %s3865_s16 = smov (!%p1661_p8, %s3861_s16), 383 }
  0x9d   :  { %2094 = vmatpush1.bf16.msra.mxu0 %v2093_v47  ;;  %v169_v5 = vld [vmem:[%s3848_s2 + $0x478] sm:$0xff]  ;;  %v2103_v8 = vpack.c.bf16 %v167_v3, %v155_v2  ;;  %v166_v10 = vld [vmem:[%s3848_s2 + $0x460] sm:$0xff]  ;;  %v156_v11 = vld [vmem:[%s3848_s2 + $0x410] sm:$0xff]  ;;  %s916_s20 = sshra.s32 %s3863_s17, 3  ;;  %s919_s24 = sand.u32 7, %s3863_s17 }
  0x9e   :  { %2158 = vmatpush1.bf16.msra.mxu1 %v2157_v48  ;;  %2096 = vmatprep.subr.bf16.mxu0 %v2095_v49  ;;  %v2167_v12 = vpack.c.bf16 %v169_v5, %v157_v4  ;;  %v168_v13 = vld [vmem:[%s3848_s2 + $0x470] sm:$0xff]  ;;  %v179_v14 = vld [vmem:[%s3848_s2 + $0x4c8] sm:$0xff]  ;;  %v181_v17 = vld [vmem:[%s3848_s2 + $0x4d8] sm:$0xff]  ;;  %v2105_v20 = vpack.c.bf16 %v166_v10, %v154_v9  ;;  %s1657_s25 = smul.u32 96, %s916_s20  ;;  %s1035_s26 = sshra.s32 %s3865_s16, 3 }
  0x9f   :  { %2160 = vmatprep.subr.bf16.mxu1 %v2159_v19  ;;  %v191_v15 = vld [vmem:[%s3848_s2 + $0x528] sm:$0xff]  ;;  %v193_v18 = vld [vmem:[%s3848_s2 + $0x538] sm:$0xff]  ;;  %v2169_v21 = vpack.c.bf16 %v168_v13, %v156_v11  ;;  %v178_v23 = vld [vmem:[%s3848_s2 + $0x4c0] sm:$0xff]  ;;  %s1090_s0 = scalar_select %p1089_p10, %s3469_s18, 0 }
  0xa0   :  { %v2107_v22 = vpack.c.bf16 %v191_v15, %v179_v14  ;;  %v190_v24 = vld [vmem:[%s3848_s2 + $0x520] sm:$0xff]  ;;  %v180_v25 = vld [vmem:[%s3848_s2 + $0x4d0] sm:$0xff]  ;;  %v2171_v26 = vpack.c.bf16 %v193_v18, %v181_v17  ;;  %v203_v28 = vld [vmem:[%s3848_s2 + $0x588] sm:$0xff]  ;;  %s1038_s27 = sand.u32 7, %s3865_s16  ;;  %p1679_p12 = scmp.lt.s32.totalorder %s3469_s18, 383 }
  0xa1   :  { %2098 = vmatpush1.bf16.msra.mxu0 %v2097_v58  ;;  %v192_v27 = vld [vmem:[%s3848_s2 + $0x530] sm:$0xff]  ;;  %v215_v29 = vld [vmem:[%s3848_s2 + $0x5e8] sm:$0xff]  ;;  %v205_v30 = vld [vmem:[%s3848_s2 + $0x598] sm:$0xff]  ;;  %v2109_v32 = vpack.c.bf16 %v190_v24, %v178_v23  ;;  %s1666_s28 = smul.u32 96, %s1035_s26  ;;  %s922_s6 = sadd.s32 %s1657_s25, %s919_s24 }
  0xa2   :  { %2162 = vmatpush1.bf16.msra.mxu1 %v2161_v59  ;;  %2100 = vmatprep.subr.bf16.mxu0 %v2099_v60  ;;  %v217_v31 = vld [vmem:[%s3848_s2 + $0x5f8] sm:$0xff]  ;;  %v2173_v33 = vpack.c.bf16 %v192_v27, %v180_v25  ;;  %v2111_v34 = vpack.c.bf16 %v215_v29, %v203_v28  ;;  %v202_v35 = vld [vmem:[%s3848_s2 + $0x580] sm:$0xff]  ;;  %v204_v37 = vld [vmem:[%s3848_s2 + $0x590] sm:$0xff]  ;;  %s3871_s0 = smov (!%p1679_p12, %s1090_s0), 383  ;;  %s3533_s12 = scalar_lea.vmem %s3850_s4, %s922_s6 }
  0xa3   :  { %2164 = vmatprep.subr.bf16.mxu1 %v2163_v0  ;;  %v214_v36 = vld [vmem:[%s3848_s2 + $0x5e0] sm:$0xff]  ;;  %v2175_v38 = vpack.c.bf16 %v217_v31, %v205_v30  ;;  %v216_v39 = vld [vmem:[%s3848_s2 + $0x5f0] sm:$0xff]  ;;  %v227_v40 = vld [vmem:[%s3848_s2 + $0x648] sm:$0xff]  ;;  %s1041_s13 = sadd.s32 %s1666_s28, %s1038_s27  ;;  %s1093_s15 = sshra.s32 %s3871_s0, 3 }
  0xa4   :  { %v239_v41 = vld [vmem:[%s3848_s2 + $0x6a8] sm:$0xff]  ;;  %v229_v16 = vld [vmem:[%s3848_s2 + $0x658] sm:$0xff]  ;;  %v2113_v43 = vpack.c.bf16 %v214_v36, %v202_v35  ;;  %v2177_v44 = vpack.c.bf16 %v216_v39, %v204_v37  ;;  %v226_v46 = vld [vmem:[%s3848_s2 + $0x640] sm:$0xff]  ;;  %s3547_s18 = scalar_lea.vmem %s3850_s4, %s1041_s13  ;;  %p1147_p1 = scmp.gt.s32.totalorder %s3475_s19, 0 }
  0xa5   :  { %2102 = vmatpush1.bf16.msra.mxu0 %v2101_v6  ;;  %v241_v42 = vld [vmem:[%s3848_s2 + $0x6b8] sm:$0xff]  ;;  %v2115_v45 = vpack.c.bf16 %v239_v41, %v227_v40  ;;  %v238_v47 = vld [vmem:[%s3848_s2 + $0x6a0] sm:$0xff]  ;;  %v228_v48 = vld [vmem:[%s3848_s2 + $0x650] sm:$0xff]  ;;  %s1096_s24 = sand.u32 7, %s3871_s0  ;;  %s1684_s25 = smul.u32 96, %s1093_s15 }
  0xa6   :  { %2166 = vmatpush1.bf16.msra.mxu1 %v2165_v7  ;;  %2104 = vmatprep.subr.bf16.mxu0 %v2103_v8  ;;  %v2179_v49 = vpack.c.bf16 %v241_v42, %v229_v16  ;;  %v240_v50 = vld [vmem:[%s3848_s2 + $0x6b0] sm:$0xff]  ;;  %v251_v51 = vld [vmem:[%s3848_s2 + $0x708] sm:$0xff]  ;;  %v253_v19 = vld [vmem:[%s3848_s2 + $0x718] sm:$0xff]  ;;  %v2117_v54 = vpack.c.bf16 %v238_v47, %v226_v46  ;;  %p1176_p2 = scmp.gt.s32.totalorder %s3480_s21, 0  ;;  %p1697_p3 = scmp.lt.s32.totalorder %s3475_s19, 383 }
  0xa7   :  { %2168 = vmatprep.subr.bf16.mxu1 %v2167_v12  ;;  %v263_v52 = vld [vmem:[%s3848_s2 + $0x768] sm:$0xff]  ;;  %v265_v53 = vld [vmem:[%s3848_s2 + $0x778] sm:$0xff]  ;;  %v2181_v55 = vpack.c.bf16 %v240_v50, %v228_v48  ;;  %v250_v57 = vld [vmem:[%s3848_s2 + $0x700] sm:$0xff]  ;;  %s1148_s27 = scalar_select %p1147_p1, %s3475_s19, 0 }
  0xa8   :  { %v2119_v56 = vpack.c.bf16 %v263_v52, %v251_v51  ;;  %v262_v58 = vld [vmem:[%s3848_s2 + $0x760] sm:$0xff]  ;;  %v252_v59 = vld [vmem:[%s3848_s2 + $0x710] sm:$0xff]  ;;  %v2183_v60 = vpack.c.bf16 %v265_v53, %v253_v19  ;;  %v275_v62 = vld [vmem:[%s3848_s2 + $0x7c8] sm:$0xff]  ;;  %p1706_p4 = scmp.lt.s32.totalorder %s3480_s21, 383  ;;  %s3875_s21 = smov (!%p1176_p2, %s3480_s21), 0 }
  0xa9   :  { %2106 = vmatpush1.bf16.msra.mxu0 %v2105_v20  ;;  %v264_v61 = vld [vmem:[%s3848_s2 + $0x770] sm:$0xff]  ;;  %v287_v63 = vld [vmem:[%s3848_s2 + $0x828] sm:$0xff]  ;;  %v277_v0 = vld [vmem:[%s3848_s2 + $0x7d8] sm:$0xff]  ;;  %v2121_v2 = vpack.c.bf16 %v262_v58, %v250_v57  ;;  %s1099_s29 = sadd.s32 %s1684_s25, %s1096_s24  ;;  %s3877_s27 = smov (!%p1697_p3, %s1148_s27), 383 }
  0xaa   :  { %2170 = vmatpush1.bf16.msra.mxu1 %v2169_v21  ;;  %2108 = vmatprep.subr.bf16.mxu0 %v2107_v22  ;;  %v289_v1 = vld [vmem:[%s3848_s2 + $0x838] sm:$0xff]  ;;  %v2185_v3 = vpack.c.bf16 %v264_v61, %v252_v59  ;;  %v2123_v4 = vpack.c.bf16 %v287_v63, %v275_v62  ;;  %v274_v5 = vld [vmem:[%s3848_s2 + $0x7c0] sm:$0xff]  ;;  %v276_v7 = vld [vmem:[%s3848_s2 + $0x7d0] sm:$0xff]  ;;  %p1205_p5 = scmp.gt.s32.totalorder %s3483_s22, 0  ;;  %s3879_s21 = smov (!%p1706_p4, %s3875_s21), 383 }
  0xab   :  { %2172 = vmatprep.subr.bf16.mxu1 %v2171_v26  ;;  %v286_v6 = vld [vmem:[%s3848_s2 + $0x820] sm:$0xff]  ;;  %v2187_v8 = vpack.c.bf16 %v289_v1, %v277_v0  ;;  %v288_v9 = vld [vmem:[%s3848_s2 + $0x830] sm:$0xff]  ;;  %v299_v10 = vld [vmem:[%s3848_s2 + $0x888] sm:$0xff]  ;;  %s3578_s13 = scalar_lea.vmem %s3850_s4, %s1099_s29  ;;  %s1151_s17 = sshra.s32 %s3877_s27, 3 }
  0xac   :  { %v311_v11 = vld [vmem:[%s3848_s2 + $0x8e8] sm:$0xff]  ;;  %v301_v12 = vld [vmem:[%s3848_s2 + $0x898] sm:$0xff]  ;;  %v2125_v14 = vpack.c.bf16 %v286_v6, %v274_v5  ;;  %v2189_v15 = vpack.c.bf16 %v288_v9, %v276_v7  ;;  %v298_v18 = vld [vmem:[%s3848_s2 + $0x880] sm:$0xff]  ;;  %v414_v9 = vlaneseq  ;;  %p1715_p6 = scmp.lt.s32.totalorder %s3483_s22, 383  ;;  %s1154_s24 = sand.u32 7, %s3877_s27 }
  0xad   :  { %2110 = vmatpush1.bf16.msra.mxu0 %v2109_v32  ;;  %v313_v13 = vld [vmem:[%s3848_s2 + $0x8f8] sm:$0xff]  ;;  %v2127_v17 = vpack.c.bf16 %v311_v11, %v299_v10  ;;  %v310_v20 = vld [vmem:[%s3848_s2 + $0x8e0] sm:$0xff]  ;;  %v300_v21 = vld [vmem:[%s3848_s2 + $0x890] sm:$0xff]  ;;  %p1234_p7 = scmp.gt.s32.totalorder %s3486_s23, 0  ;;  %s1702_s25 = smul.u32 96, %s1151_s17 }
  0xae   :  { %2174 = vmatpush1.bf16.msra.mxu1 %v2173_v33  ;;  %2112 = vmatprep.subr.bf16.mxu0 %v2111_v34  ;;  %v2191_v22 = vpack.c.bf16 %v313_v13, %v301_v12  ;;  %v312_v23 = vld [vmem:[%s3848_s2 + $0x8f0] sm:$0xff]  ;;  %v323_v24 = vld [vmem:[%s3848_s2 + $0x948] sm:$0xff]  ;;  %v325_v26 = vld [vmem:[%s3848_s2 + $0x958] sm:$0xff]  ;;  %v2129_v28 = vpack.c.bf16 %v310_v20, %v298_v18  ;;  %v3490_v10 = vshrl.u32 %v414_v9, 7  ;;  %p1290_p8 = scmp.gt.s32.totalorder %s3523_s8, 0  ;;  %p1733_p10 = scmp.lt.s32.totalorder %s3523_s8, 383 }
  0xaf   :  { %2176 = vmatprep.subr.bf16.mxu1 %v2175_v38  ;;  %v335_v25 = vld [vmem:[%s3848_s2 + $0x9a8] sm:$0xff]  ;;  %v337_v27 = vld [vmem:[%s3848_s2 + $0x9b8] sm:$0xff]  ;;  %v2193_v29 = vpack.c.bf16 %v312_v23, %v300_v21  ;;  %v322_v31 = vld [vmem:[%s3848_s2 + $0x940] sm:$0xff]  ;;  %s3596_s27 = sld [smem:[#allocation3 + $0x83]]  ;;  %p1742_p12 = scmp.lt.s32.totalorder %s3525_s9, 383  ;;  %vm3788_vm0 = vcmp.lt.s32.totalorder %v414_v9, 448 }
  0xb0   :  { %v2131_v30 = vpack.c.bf16 %v335_v25, %v323_v24  ;;  %v334_v32 = vld [vmem:[%s3848_s2 + $0x9a0] sm:$0xff]  ;;  %v324_v33 = vld [vmem:[%s3848_s2 + $0x950] sm:$0xff]  ;;  %v2195_v34 = vpack.c.bf16 %v337_v27, %v325_v26  ;;  %v347_v36 = vld [vmem:[%s3848_s2 + $0xa08] sm:$0xff]  ;;  %v416_v11 = vsub.s32 0, %v3490_v10  ;;  %v424_v13 = vsub.s32 2, %v3490_v10  ;;  %s3883_s8 = smov (!%p1290_p8, %s3523_s8), 0 }
  0xb1   :  { %2114 = vmatpush1.bf16.msra.mxu0 %v2113_v43  ;;  %v336_v35 = vld [vmem:[%s3848_s2 + $0x9b0] sm:$0xff]  ;;  %v359_v37 = vld [vmem:[%s3848_s2 + $0xa68] sm:$0xff]  ;;  %v349_v38 = vld [vmem:[%s3848_s2 + $0xa18] sm:$0xff]  ;;  %v2133_v40 = vpack.c.bf16 %v334_v32, %v322_v31  ;;  %v428_v18 = vsub.s32 3, %v3490_v10  ;;  %s3887_s8 = smov (!%p1733_p10, %s3883_s8), 383 }
  0xb2   :  { %2178 = vmatpush1.bf16.msra.mxu1 %v2177_v44  ;;  %2116 = vmatprep.subr.bf16.mxu0 %v2115_v45  ;;  %v361_v39 = vld [vmem:[%s3848_s2 + $0xa78] sm:$0xff]  ;;  %v2197_v41 = vpack.c.bf16 %v336_v35, %v324_v33  ;;  %v2135_v16 = vpack.c.bf16 %v359_v37, %v347_v36  ;;  %v346_v42 = vld [vmem:[%s3848_s2 + $0xa00] sm:$0xff]  ;;  %v348_v44 = vld [vmem:[%s3848_s2 + $0xa10] sm:$0xff]  ;;  %s1294_s17 = sshra.s32 %s3887_s8, 3 }
  0xb3   :  { %2180 = vmatprep.subr.bf16.mxu1 %v2179_v49  ;;  %v358_v43 = vld [vmem:[%s3848_s2 + $0xa60] sm:$0xff]  ;;  %v2199_v45 = vpack.c.bf16 %v361_v39, %v349_v38  ;;  %v360_v46 = vld [vmem:[%s3848_s2 + $0xa70] sm:$0xff]  ;;  %v371_v47 = vld [vmem:[%s3848_s2 + $0xac8] sm:$0xff] }
  0xb4   :  { %v383_v48 = vld [vmem:[%s3848_s2 + $0xb28] sm:$0xff]  ;;  %v373_v49 = vld [vmem:[%s3848_s2 + $0xad8] sm:$0xff]  ;;  %v2137_v51 = vpack.c.bf16 %v358_v43, %v346_v42  ;;  %v2201_v52 = vpack.c.bf16 %v360_v46, %v348_v44  ;;  %v370_v53 = vld [vmem:[%s3848_s2 + $0xac0] sm:$0xff]  ;;  %v444_v42 = vsub.s32 7, %v3490_v10 }
  0xb5   :  { %2118 = vmatpush1.bf16.msra.mxu0 %v2117_v54  ;;  %v385_v50 = vld [vmem:[%s3848_s2 + $0xb38] sm:$0xff]  ;;  %v2139_v19 = vpack.c.bf16 %v383_v48, %v371_v47  ;;  %v382_v54 = vld [vmem:[%s3848_s2 + $0xb20] sm:$0xff]  ;;  %v384_v57 = vld [vmem:[%s3848_s2 + $0xb30] sm:$0xff] }
  0xb6   :  { %2182 = vmatpush1.bf16.msra.mxu1 %v2181_v55  ;;  %2120 = vmatprep.subr.bf16.mxu0 %v2119_v56  ;;  %v372_v55 = vld [vmem:[%s3848_s2 + $0xad0] sm:$0xff]  ;;  %v2203_v56 = vpack.c.bf16 %v385_v50, %v373_v49  ;;  %v395_v58 = vld [vmem:[%s3848_s2 + $0xb88] sm:$0xff]  ;;  %v409_v61 = vld [vmem:[%s3848_s2 + $0xbf8] sm:$0xff]  ;;  %v2141_v62 = vpack.c.bf16 %v382_v54, %v370_v53 }
  0xb7   :  { %2184 = vmatprep.subr.bf16.mxu1 %v2183_v60  ;;  %v407_v59 = vld [vmem:[%s3848_s2 + $0xbe8] sm:$0xff]  ;;  %v397_v60 = vld [vmem:[%s3848_s2 + $0xb98] sm:$0xff]  ;;  %v2205_v63 = vpack.c.bf16 %v384_v57, %v372_v55  ;;  %v394_v1 = vld [vmem:[%s3848_s2 + $0xb80] sm:$0xff] }
  0xb8   :  { %v2143_v0 = vpack.c.bf16 %v407_v59, %v395_v58  ;;  %v408_v5 = vld [vmem:[%s3848_s2 + $0xbf0] sm:$0xff]  ;;  %v3503_v12 = vld [vmem:[%s3849_s3] sm:$0xff] }
  0xb9   :  { %2122 = vmatpush1.bf16.msra.mxu0 %v2121_v2  ;;  %v406_v2 = vld [vmem:[%s3848_s2 + $0xbe0] sm:$0xff]  ;;  %v417_v20 = vrot.slane %v3503_v12, %v416_v11  ;;  %v425_v21 = vrot.slane %v3503_v12, %v424_v13  ;;  %v429_v24 = vrot.slane %v3503_v12, %v428_v18  ;;  %v445_v46 = vrot.slane %v3503_v12, %v444_v42 }
  0xba   :  { %2186 = vmatpush1.bf16.msra.mxu1 %v2185_v3  ;;  %2124 = vmatprep.subr.bf16.mxu0 %v2123_v4  ;;  %v2207_v3 = vpack.c.bf16 %v409_v61, %v397_v60  ;;  %v396_v4 = vld [vmem:[%s3848_s2 + $0xb90] sm:$0xff]  ;;  %v2145_v6 = vpack.c.bf16 %v406_v2, %v394_v1  ;;  %s3467_s2 = sld [smem:[#allocation3 + $0x2]] }
  0xbb   :  { %2188 = vmatprep.subr.bf16.mxu1 %v2187_v8  ;;  %v2209_v7 = vpack.c.bf16 %v408_v5, %v396_v4  ;;  %v2216_v8 = vld.sshfl [vmem:[%s3847_s1] sm:$0x33 pattern:$0x76325410]  ;;  %s3473_s1 = sld [smem:[#allocation3 + $0x4]] }
  0xbc   :  { %v3670_v55 = vld [vmem:[%s3533_s12] ss:$8 sm:$0xf] }
  0xbd   :  { %2126 = vmatpush1.bf16.msra.mxu0 %v2125_v14  ;;  %v420_v14 = vsub.s32 1, %v3490_v10  ;;  %v3676_v57 = vld [vmem:[%s3547_s18] ss:$8 sm:$0xf] }
  0xbe   :  { %2190 = vmatpush1.bf16.msra.mxu1 %v2189_v15  ;;  %2128 = vmatprep.subr.bf16.mxu0 %v2127_v17  ;;  %v2256_v15 = vmov 1966171168   ;;  %v3679_v58 = vld [vmem:[%s3547_s18] ss:$8 sm:$0xf0] }
  0xbf   :  { %2192 = vmatprep.subr.bf16.mxu1 %v2191_v22  ;;  %v949_v17 = vunpack.c.l.s4 %v2256_v15  ;;  %v421_v22 = vrot.slane %v3503_v12, %v420_v14 }
  0xc0   :  { %p1060_p9 = scmp.gt.s32.totalorder %s3467_s2, 0  ;;  %p1670_p11 = scmp.lt.s32.totalorder %s3467_s2, 383 }
  0xc1   :  { %2130 = vmatpush1.bf16.msra.mxu0 %v2129_v28  ;;  %p1118_p13 = scmp.gt.s32.totalorder %s3473_s1, 0  ;;  %p1688_p0 = scmp.lt.s32.totalorder %s3473_s1, 383  ;;  %v950_v23 = vunpack.c.0.s8 %v949_v17 }
  0xc2   :  { %2194 = vmatpush1.bf16.msra.mxu1 %v2193_v29  ;;  %2132 = vmatprep.subr.bf16.mxu0 %v2131_v30  ;;  %s3867_s2 = smov (!%p1060_p9, %s3467_s2), 0  ;;  %p1724_p9 = scmp.lt.s32.totalorder %s3486_s23, 383 }
  0xc3   :  { %2196 = vmatprep.subr.bf16.mxu1 %v2195_v34  ;;  %s3869_s2 = smov (!%p1670_p11, %s3867_s2), 383  ;;  %v3542_v31 = vsub.s32 %v950_v23, %v3490_v10  ;;  %p1319_p11 = scmp.gt.s32.totalorder %s3525_s9, 0 }
  0xc4   :  { %s1119_s7 = scalar_select %p1118_p13, %s3473_s1, 0 }
  0xc5   :  { %2134 = vmatpush1.bf16.msra.mxu0 %v2133_v40  ;;  %s1064_s14 = sshra.s32 %s3869_s2, 3  ;;  %s1067_s1 = sand.u32 7, %s3869_s2  ;;  %v432_v40 = vsub.s32 4, %v3490_v10 }
  0xc6   :  { %2198 = vmatpush1.bf16.msra.mxu1 %v2197_v41  ;;  %2136 = vmatprep.subr.bf16.mxu0 %v2135_v16  ;;  %s3873_s7 = smov (!%p1688_p0, %s1119_s7), 383  ;;  %s1675_s20 = smul.u32 96, %s1064_s14  ;;  %v440_v41 = vsub.s32 6, %v3490_v10  ;;  %v436_v16 = vsub.s32 5, %v3490_v10 }
  0xc7   :  { %2200 = vmatprep.subr.bf16.mxu1 %v2199_v45  ;;  %s1122_s26 = sshra.s32 %s3873_s7, 3  ;;  %s1125_s28 = sand.u32 7, %s3873_s7  ;;  %v433_v43 = vrot.slane %v3503_v12, %v432_v40 }
  0xc8   :  { %s1693_s2 = smul.u32 96, %s1122_s26  ;;  %s1070_s0 = sadd.s32 %s1675_s20, %s1067_s1  ;;  %v441_v44 = vrot.slane %v3503_v12, %v440_v41  ;;  %v437_v45 = vrot.slane %v3503_v12, %v436_v16 }
  0xc9   :  { %2138 = vmatpush1.bf16.msra.mxu0 %v2137_v51  ;;  %s3573_s7 = scalar_lea.vmem %s3850_s4, %s1070_s0  ;;  %s1180_s20 = sshra.s32 %s3879_s21, 3 }
  0xca   :  { %2202 = vmatpush1.bf16.msra.mxu1 %v2201_v52  ;;  %2140 = vmatprep.subr.bf16.mxu0 %v2139_v19  ;;  %s1128_s30 = sadd.s32 %s1693_s2, %s1125_s28  ;;  %s1183_s26 = sand.u32 7, %s3879_s21  ;;  %v3688_v60 = vld [vmem:[%s3573_s7] ss:$8 sm:$0xf] }
  0xcb   :  { %2204 = vmatprep.subr.bf16.mxu1 %v2203_v56  ;;  %s3583_s16 = scalar_lea.vmem %s3850_s4, %s1128_s30  ;;  %s1711_s28 = smul.u32 96, %s1180_s20  ;;  %v3673_v56 = vld [vmem:[%s3533_s12] ss:$8 sm:$0xf0] }
  0xcc   :  { %s1206_s1 = scalar_select %p1205_p5, %s3483_s22, 0  ;;  %v1073_v61 = vld [vmem:[%s3573_s7] ss:$8 sm:$0xf0] }
  0xcd   :  { %2142 = vmatpush1.bf16.msra.mxu0 %v2141_v62  ;;  %s1235_s2 = scalar_select %p1234_p7, %s3486_s23, 0  ;;  %v1101_v62 = vld [vmem:[%s3578_s13] ss:$8 sm:$0xf] }
  0xce   :  { %2206 = vmatpush1.bf16.msra.mxu1 %v2205_v63  ;;  %2144 = vmatprep.subr.bf16.mxu0 %v2143_v0  ;;  %s3881_s1 = smov (!%p1715_p6, %s1206_s1), 383  ;;  %s1157_s0 = sadd.s32 %s1702_s25, %s1154_s24  ;;  %v1102_v63 = vld [vmem:[%s3578_s13] ss:$8 sm:$0xf0] }
  0xcf   :  { %2208 = vmatprep.subr.bf16.mxu1 %v2207_v3  ;;  %s1186_s29 = sadd.s32 %s1711_s28, %s1183_s26  ;;  %s1209_s22 = sshra.s32 %s3881_s1, 3  ;;  %v1130_v0 = vld [vmem:[%s3583_s16] ss:$8 sm:$0xf]  ;;  %v1103_v40 = vor.u32 %v1102_v63, %v1101_v62 }
  0xd0   :  { %s3885_s2 = smov (!%p1724_p9, %s1235_s2), 383  ;;  %s3601_s19 = scalar_lea.vmem %s3850_s4, %s1157_s0  ;;  %v1131_v1 = vld [vmem:[%s3583_s16] ss:$8 sm:$0xf0] }
  0xd1   :  { %2146 = vmatpush1.bf16.msra.mxu0 %v2145_v6  ;;  %s3607_s10 = scalar_lea.vmem %s3850_s4, %s1186_s29  ;;  %s1212_s11 = sand.u32 7, %s3881_s1  ;;  %v1159_v3 = vld [vmem:[%s3601_s19] ss:$8 sm:$0xf]  ;;  %v1132_v41 = vor.u32 %v1131_v1, %v1130_v0 }
  0xd2   :  { %2210 = vmatpush1.bf16.msra.mxu1 %v2209_v7  ;;  %s1720_s14 = smul.u32 96, %s1209_s22  ;;  %s1238_s15 = sshra.s32 %s3885_s2, 3  ;;  %v1160_v4 = vld [vmem:[%s3601_s19] ss:$8 sm:$0xf0] }
  0xd3   :  { %s3889_s9 = smov (!%p1319_p11, %s3525_s9), 0  ;;  %p1348_p13 = scmp.gt.s32.totalorder %s3596_s27, 0  ;;  %v1188_v6 = vld [vmem:[%s3607_s10] ss:$8 sm:$0xf]  ;;  %v1161_v16 = vor.u32 %v1160_v4, %v1159_v3 }
  0xd4   :  { %834 = vmatmul.mubr.f32.vlgmr.msra.gmra.mrb[4].mxu0 %v2216_v8  ;;  %s3613_s20 = sld [smem:[#allocation3 + $0x84]]  ;;  %s1241_s24 = sand.u32 7, %s3885_s2  ;;  %v1189_v7 = vld [vmem:[%s3607_s10] ss:$8 sm:$0xf0] }
  0xd5   :  { %905 = vmatmul.mubr.f32.vlgmr.msra.gmra.mrb[4].mxu1 %v2216_v8  ;;  %s1729_s25 = smul.u32 96, %s1238_s15  ;;  %s1297_s26 = sand.u32 7, %s3887_s8 }
  0xd6   :  { %s1738_s28 = smul.u32 96, %s1294_s17  ;;  %s3891_s9 = smov (!%p1742_p12, %s3889_s9), 383 }
  0xd7   :  { %s1349_s1 = scalar_select %p1348_p13, %s3596_s27, 0 }
  0xd8   :  { %s1215_s0 = sadd.s32 %s1720_s14, %s1212_s11  ;;  %s1768_s29 = sld [smem:[#allocation3 + $0x85]] }
  0xd9   :  { %s1244_s22 = sadd.s32 %s1729_s25, %s1241_s24  ;;  %s1777_s21 = sld [smem:[#allocation3 + $0x86]] }
  0xda   :  { %s1300_s30 = sadd.s32 %s1738_s28, %s1297_s26  ;;  %p1751_p0 = scmp.lt.s32.totalorder %s3596_s27, 383 }
  0xdb   :  { %p1377_p1 = scmp.gt.s32.totalorder %s3613_s20, 0  ;;  %s1786_s23 = sld [smem:[#allocation3 + $0x87]] }
  0xdc   :  { %s3623_s8 = scalar_lea.vmem %s3850_s4, %s1215_s0  ;;  %s3628_s5 = scalar_lea.vmem %s3850_s4, %s1244_s22 }
  0xdd   :  { %s3633_s14 = scalar_lea.vmem %s3850_s4, %s1300_s30  ;;  %s1323_s24 = sshra.s32 %s3891_s9, 3  ;;  %v1217_v8 = vld [vmem:[%s3623_s8] ss:$8 sm:$0xf] }
  0xde   :  { %s3893_s1 = smov (!%p1751_p0, %s1349_s1), 383  ;;  %s1326_s25 = sand.u32 7, %s3891_s9  ;;  %v1218_v12 = vld [vmem:[%s3623_s8] ss:$8 sm:$0xf0] }
  0xdf   :  { %s1378_s27 = scalar_select %p1377_p1, %s3613_s20, 0  ;;  %v1246_v15 = vld [vmem:[%s3628_s5] ss:$8 sm:$0xf] }
  0xe0   :  { %p1406_p2 = scmp.gt.s32.totalorder %s1768_s29, 0  ;;  %s1747_s26 = smul.u32 96, %s1323_s24  ;;  %v1247_v17 = vld [vmem:[%s3628_s5] ss:$8 sm:$0xf0] }
  0xe1   :  { %p1435_p3 = scmp.gt.s32.totalorder %s1777_s21, 0  ;;  %s1352_s28 = sshra.s32 %s3893_s1, 3 }
  0xe2   :  { %p1760_p4 = scmp.lt.s32.totalorder %s3613_s20, 383  ;;  %p1769_p5 = scmp.lt.s32.totalorder %s1768_s29, 383 }
  0xe3   :  { %p1464_p6 = scmp.gt.s32.totalorder %s1786_s23, 0  ;;  %s3895_s29 = smov (!%p1406_p2, %s1768_s29), 0 }
  0xe4   :  { %s1436_s0 = scalar_select %p1435_p3, %s1777_s21, 0 }
  0xe5   :  { %p1778_p7 = scmp.lt.s32.totalorder %s1777_s21, 383  ;;  %p1787_p8 = scmp.lt.s32.totalorder %s1786_s23, 383 }
  0xe6   :  { %s3897_s23 = smov (!%p1464_p6, %s1786_s23), 0  ;;  %s3899_s27 = smov (!%p1760_p4, %s1378_s27), 383 }
  0xe7   :  { %s3901_s29 = smov (!%p1769_p5, %s3895_s29), 383  ;;  %s3903_s0 = smov (!%p1778_p7, %s1436_s0), 383 }
  0xe8   :  { %s3905_s23 = smov (!%p1787_p8, %s3897_s23), 383  ;;  %s3654_s3 = sadd.s32 %s1747_s26, %s1326_s25 }
  0xe9   :  { %s1381_s9 = sshra.s32 %s3899_s27, 3  ;;  %s1355_s20 = sand.u32 7, %s3893_s1 }
  0xea   :  { %s1410_s22 = sshra.s32 %s3901_s29, 3  ;;  %s1756_s21 = smul.u32 96, %s1352_s28 }
  0xeb   :  { %s1439_s30 = sshra.s32 %s3903_s0, 3  ;;  %s1765_s6 = smul.u32 96, %s1381_s9 }
  0xec   :  { %s1468_s2 = sshra.s32 %s3905_s23, 3  ;;  %s1384_s15 = sand.u32 7, %s3899_s27 }
  0xed   :  { %s1774_s17 = smul.u32 96, %s1410_s22  ;;  %s1413_s11 = sand.u32 7, %s3901_s29 }
  0xee   :  { %s1783_s1 = smul.u32 96, %s1439_s30  ;;  %s1442_s24 = sand.u32 7, %s3903_s0 }
  0xef   :  { %s1792_s25 = smul.u32 96, %s1468_s2  ;;  %s1358_s27 = sadd.s32 %s1756_s21, %s1355_s20 }
  0xf0   :  { %s1471_s29 = sand.u32 7, %s3905_s23  ;;  %s1387_s26 = sadd.s32 %s1765_s6, %s1384_s15 }
  0xf1   :  { %s1416_s28 = sadd.s32 %s1774_s17, %s1413_s11  ;;  %s3685_s23 = scalar_lea.vmem %s3850_s4, %s3654_s3 }
  0xf2   :  { %s1445_s20 = sadd.s32 %s1783_s1, %s1442_s24  ;;  %s3698_s3 = scalar_lea.vmem %s3850_s4, %s1358_s27  ;;  %v1332_v23 = vld [vmem:[%s3685_s23] ss:$8 sm:$0xf0] }
  0xf3   :  { %s1474_s30 = sadd.s32 %s1792_s25, %s1471_s29  ;;  %s3706_s15 = scalar_lea.vmem %s3850_s4, %s1387_s26 }
  0xf4   :  { %s3711_s1 = scalar_lea.vmem %s3850_s4, %s1416_s28  ;;  %s3725_s27 = scalar_lea.vmem %s3850_s4, %s1445_s20 }
  0xf5   :  { %s3734_s28 = scalar_lea.vmem %s3850_s4, %s1474_s30  ;;  %v1447_v42 = vld [vmem:[%s3725_s27] ss:$8 sm:$0xf]  ;;  %s3856_s9 = sld [smem:[#allocation8_spill]] }
 0x127   :  { %v551_v25 = vpop.f32.mrb[0].mxu0 }
 0x128   :  { %v552_v26 = vadd.f32 %v551_v25, %v417_v20  ;;  %v622_v27 = vpop.f32.mrb[0].mxu1  ;;  %v553_v28 = vpop.f32.mrb[1].mxu0  ;;  %v1302_v20 = vld [vmem:[%s3633_s14] ss:$8 sm:$0xf] }
 0x129   :  { %v623_v29 = vadd.f32 %v622_v27, %v425_v21  ;;  %v554_v30 = vadd.f32 %v553_v28, %v421_v22  ;;  %v624_v32 = vpop.f32.mrb[1].mxu1  ;;  %v1303_v21 = vld [vmem:[%s3633_s14] ss:$8 sm:$0xf0]  ;;  %v1045_v28 = vor.u32 %v3679_v58, %v3676_v57 }
 0x12a   :  { %v625_v33 = vadd.f32 %v624_v32, %v429_v24  ;;  %v1331_v22 = vld [vmem:[%s3685_s23] ss:$8 sm:$0xf] }
 0x12b   :  { %v944_v34 = vcombine.low %v552_v26, %v554_v30  ;;  %v1360_v24 = vld [vmem:[%s3698_s3] ss:$8 sm:$0xf]  ;;  %v926_v26 = vor.u32 %v3673_v56, %v3670_v55  ;;  %v1333_v55 = vor.u32 %v1332_v23, %v1331_v22 }
 0x12c   :  { %v945_v35 = vcombine.low %v623_v29, %v625_v33  ;;  %v1361_v25 = vld [vmem:[%s3698_s3] ss:$8 sm:$0xf0] }
 0x12d   :  { %v3555_v36 = vrot.slane %v944_v34, %v3542_v31  ;;  %v1389_v30 = vld [vmem:[%s3706_s15] ss:$8 sm:$0xf]  ;;  %v1362_v56 = vor.u32 %v1361_v25, %v1360_v24 }
 0x12e   :  { %v3559_v37 = vrot.slane %v945_v35, %v3542_v31  ;;  %v1390_v32 = vld [vmem:[%s3706_s15] ss:$8 sm:$0xf0]  ;;  %v1074_v35 = vor.u32 %v1073_v61, %v3688_v60 }
 0x12f   :  { %v1418_v33 = vld [vmem:[%s3711_s1] ss:$8 sm:$0xf] }
 0x130   :  { %v976_v38 = vcombine.low %v3555_v36, %v3559_v37  ;;  %v1254_v39 = vcombine.high %v3555_v36, %v3559_v37  ;;  %v1419_v34 = vld [vmem:[%s3711_s1] ss:$8 sm:$0xf0] }
 0x131   :  { %v1420_v57 = vor.u32 %v1419_v34, %v1418_v33  ;;  %v1686_v33 = vld [vmem:[%s3578_s13 + $0x40] ss:$8 sm:$0xf] }
 0x167   :  { %v693_v47 = vpop.f32.mrb[2].mxu0 }
 0x168   :  { %v694_v48 = vadd.f32 %v693_v47, %v433_v43  ;;  %v764_v49 = vpop.f32.mrb[2].mxu1  ;;  %v695_v50 = vpop.f32.mrb[3].mxu0  ;;  %v1448_v43 = vld [vmem:[%s3725_s27] ss:$8 sm:$0xf0] }
 0x169   :  { %v765_v51 = vadd.f32 %v764_v49, %v441_v44  ;;  %v696_v52 = vadd.f32 %v695_v50, %v437_v45  ;;  %v766_v19 = vpop.f32.mrb[3].mxu1  ;;  %v984_v44 = vrot.slane %v976_v38, %v3542_v31  ;;  %v1262_v45 = vrot.slane %v1254_v39, %v3542_v31  ;;  %v1477_v49 = vld [vmem:[%s3734_s28] ss:$8 sm:$0xf0] }
 0x16a   :  { %v767_v53 = vadd.f32 %v766_v19, %v445_v46  ;;  %v1190_v50 = vor.u32 %v1189_v7, %v1188_v6  ;;  %v1304_v19 = vor.u32 %v1303_v21, %v1302_v20  ;;  %v1391_v38 = vor.u32 %v1390_v32, %v1389_v30  ;;  %v1668_v30 = vld [vmem:[%s3547_s18 + $0x40] ss:$8 sm:$0xf] }
 0x16b   :  { %v946_v54 = vcombine.low %v694_v48, %v696_v52  ;;  %v1476_v48 = vld [vmem:[%s3734_s28] ss:$8 sm:$0xf]  ;;  %v1248_v52 = vor.u32 %v1247_v17, %v1246_v15  ;;  %v1449_v58 = vor.u32 %v1448_v43, %v1447_v42 }
 0x16c   :  { %v947_v59 = vcombine.low %v765_v51, %v767_v53  ;;  %v1219_v51 = vor.u32 %v1218_v12, %v1217_v8  ;;  %v411_v12 = vld [vmem:[%s3856_s9 + $0x8] sm:$0xf] }
 0x16d   :  { %v968_v2 = vrot.slane %v946_v54, %v3542_v31  ;;  %v449_v15 = vrot.slane %v411_v12, %v416_v11  ;;  %v457_v17 = vrot.slane %v411_v12, %v424_v13  ;;  %v453_v20 = vrot.slane %v411_v12, %v420_v14  ;;  %v1677_v32 = vld [vmem:[%s3573_s7 + $0x40] ss:$8 sm:$0xf] }
 0x16e   :  { %v975_v5 = vrot.slane %v947_v59, %v3542_v31  ;;  %v1478_v59 = vor.u32 %v1477_v49, %v1476_v48  ;;  %v461_v21 = vrot.slane %v411_v12, %v428_v18  ;;  %v1731_v43 = vld [vmem:[%s3628_s5 + $0x40] ss:$8 sm:$0xf] }
 0x16f   :  { %v1758_v48 = vld [vmem:[%s3698_s3 + $0x40] ss:$8 sm:$0xf] }
 0x170   :  { %v977_v27 = vcombine.low %v968_v2, %v975_v5  ;;  %v1255_v29 = vcombine.high %v968_v2, %v975_v5  ;;  %v1767_v49 = vld [vmem:[%s3706_s15 + $0x40] ss:$8 sm:$0xf] }
 0x172   :  { %v991_v46 = vrot.slane %v977_v27, %v3542_v31  ;;  %v1269_v47 = vrot.slane %v1255_v29, %v3542_v31  ;;  %v1659_v29 = vld [vmem:[%s3533_s12 + $0x40] ss:$8 sm:$0xf]  ;;  %s2257_s12 = smov [#allocation4]  }
 0x173   :  { %s1497_s18 = sshll.u32 %s2257_s12, 4  ;;  %s3803_s18 = int_to_ptr.vmem [resolvable:$true] %s1497_s18 }
 0x174   :  { %v992_v53 = vcombine.low %v984_v44, %v991_v46  ;;  %v1270_v54 = vcombine.low %v1262_v45, %v1269_v47  ;;  %v1740_v44 = vld [vmem:[%s3633_s14 + $0x40] ss:$8 sm:$0xf]  ;;  %s2229_s5 = scalar_lea.vmem %s3803_s18, 3072  ;;  %p2234_p10 = scmp.lt.s32.totalorder %s3803_s18, %s3803_s18 }
 0x175   :  { %v1749_v45 = vld [vmem:[%s3685_s23 + $0x40] ss:$8 sm:$0xf]  ;;  %p2230_p9 = scmp.ne.s32.totalorder %s3803_s18, %s2229_s5  ;;  %p2235_p11 = scmp.lt.s32.totalorder %s2229_s5, %s2229_s5 }
 0x176   :  { %v1019_v36 = vadd.f32 %v992_v53, %v926_v26  ;;  %v1051_v37 = vadd.f32 %v1045_v28, %v992_v53  ;;  %v1080_v39 = vadd.f32 %v1074_v35, %v992_v53  ;;  %v1109_v60 = vadd.f32 %v1103_v40, %v992_v53  ;;  %v1695_v35 = vld [vmem:[%s3583_s16 + $0x40] ss:$8 sm:$0xf] }
 0x177   :  { %v1138_v61 = vadd.f32 %v1132_v41, %v992_v53  ;;  %v1167_v62 = vadd.f32 %v1161_v16, %v992_v53  ;;  %v1196_v63 = vadd.f32 %v1190_v50, %v992_v53  ;;  %v1225_v0 = vadd.f32 %v1219_v51, %v992_v53  ;;  %v1704_v40 = vld [vmem:[%s3601_s19 + $0x40] ss:$8 sm:$0xf]  ;;  %p2236_p12 = por %p2235_p11, %p2234_p10 }
 0x178   :  { %1021 = vst [vmem:[#allocation4] ss:$8 sm:$0xf] %v1019_v36  ;;  %1022 = vst [vmem:[#allocation4] ss:$8 sm:$0xf0] %v1019_v36  ;;  %v1281_v1 = vadd.f32 %v1270_v54, %v1248_v52  ;;  %v1310_v2 = vadd.f32 %v1304_v19, %v1270_v54  ;;  %v1339_v3 = vadd.f32 %v1333_v55, %v1270_v54 }
 0x179   :  { %1054 = vst [vmem:[#allocation4 + $0x1] ss:$8 sm:$0xf] %v1051_v37  ;;  %1055 = vst [vmem:[#allocation4 + $0x1] ss:$8 sm:$0xf0] %v1051_v37  ;;  %v1368_v4 = vadd.f32 %v1362_v56, %v1270_v54  ;;  %v1397_v5 = vadd.f32 %v1391_v38, %v1270_v54  ;;  %v1426_v6 = vadd.f32 %v1420_v57, %v1270_v54  ;;  %p2237_p13 = pnand %p2236_p12, %p2230_p9 }
 0x17a   :  { %1083 = vst [vmem:[#allocation4 + $0x2] ss:$8 sm:$0xf] %v1080_v39  ;;  %1084 = vst [vmem:[#allocation4 + $0x2] ss:$8 sm:$0xf0] %v1080_v39  ;;  %v1455_v7 = vadd.f32 %v1449_v58, %v1270_v54  ;;  %v1484_v8 = vadd.f32 %v1478_v59, %v1270_v54 }
 0x17b   :  { %1112 = vst [vmem:[#allocation4 + $0x3] ss:$8 sm:$0xf] %v1109_v60  ;;  %1113 = vst [vmem:[#allocation4 + $0x3] ss:$8 sm:$0xf0] %v1109_v60 }
 0x17c   :  { %1141 = vst [vmem:[#allocation4 + $0x4] ss:$8 sm:$0xf] %v1138_v61  ;;  %1142 = vst [vmem:[#allocation4 + $0x4] ss:$8 sm:$0xf0] %v1138_v61 }
 0x17d   :  { %1170 = vst [vmem:[#allocation4 + $0x5] ss:$8 sm:$0xf] %v1167_v62  ;;  %1171 = vst [vmem:[#allocation4 + $0x5] ss:$8 sm:$0xf0] %v1167_v62 }
 0x17e   :  { %1199 = vst [vmem:[#allocation4 + $0x6] ss:$8 sm:$0xf] %v1196_v63  ;;  %1200 = vst [vmem:[#allocation4 + $0x6] ss:$8 sm:$0xf0] %v1196_v63 }
 0x17f   :  { %1228 = vst [vmem:[#allocation4 + $0x7] ss:$8 sm:$0xf] %v1225_v0  ;;  %1229 = vst [vmem:[#allocation4 + $0x7] ss:$8 sm:$0xf0] %v1225_v0 }
 0x180   :  { %1284 = vst [vmem:[#allocation4 + $0x60] ss:$8 sm:$0xf] %v1281_v1  ;;  %1285 = vst [vmem:[#allocation4 + $0x60] ss:$8 sm:$0xf0] %v1281_v1 }
 0x181   :  { %1313 = vst [vmem:[#allocation4 + $0x61] ss:$8 sm:$0xf] %v1310_v2  ;;  %1314 = vst [vmem:[#allocation4 + $0x61] ss:$8 sm:$0xf0] %v1310_v2 }
 0x182   :  { %1342 = vst [vmem:[#allocation4 + $0x62] ss:$8 sm:$0xf] %v1339_v3  ;;  %1343 = vst [vmem:[#allocation4 + $0x62] ss:$8 sm:$0xf0] %v1339_v3 }
 0x183   :  { %1371 = vst [vmem:[#allocation4 + $0x63] ss:$8 sm:$0xf] %v1368_v4  ;;  %1372 = vst [vmem:[#allocation4 + $0x63] ss:$8 sm:$0xf0] %v1368_v4 }
 0x184   :  { %1400 = vst [vmem:[#allocation4 + $0x64] ss:$8 sm:$0xf] %v1397_v5  ;;  %1401 = vst [vmem:[#allocation4 + $0x64] ss:$8 sm:$0xf0] %v1397_v5 }
 0x185   :  { %1429 = vst [vmem:[#allocation4 + $0x65] ss:$8 sm:$0xf] %v1426_v6  ;;  %1430 = vst [vmem:[#allocation4 + $0x65] ss:$8 sm:$0xf0] %v1426_v6 }
 0x186   :  { %1458 = vst [vmem:[#allocation4 + $0x66] ss:$8 sm:$0xf] %v1455_v7  ;;  %1459 = vst [vmem:[#allocation4 + $0x66] ss:$8 sm:$0xf0] %v1455_v7 }
 0x187   :  { %1487 = vst [vmem:[#allocation4 + $0x67] ss:$8 sm:$0xf] %v1484_v8  ;;  %1488 = vst [vmem:[#allocation4 + $0x67] ss:$8 sm:$0xf0] %v1484_v8 }
 0x188   :  { %v1713_v41 = vld [vmem:[%s3607_s10 + $0x40] ss:$8 sm:$0xf] }
 0x189   :  { %v1722_v16 = vld [vmem:[%s3623_s8 + $0x40] ss:$8 sm:$0xf] }
 0x18a   :  { %v1776_v51 = vld [vmem:[%s3711_s1 + $0x40] ss:$8 sm:$0xf] }
 0x18b   :  { %v1785_v55 = vld [vmem:[%s3725_s27 + $0x40] ss:$8 sm:$0xf] }
 0x18c   :  { %v1794_v56 = vld [vmem:[%s3734_s28 + $0x40] ss:$8 sm:$0xf] }
 0x1a7   :  { %v835_v22 = vpop.f32.mrb[4].mxu0 }
 0x1a8   :  { %v836_v23 = vadd.f32 %v835_v22, %v449_v15  ;;  %v906_v24 = vpop.f32.mrb[4].mxu1  ;;  %v837_v25 = vpop.f32.mrb[5].mxu0 }
 0x1a9   :  { %v907_v11 = vadd.f32 %v906_v24, %v457_v17  ;;  %v838_v26 = vadd.f32 %v837_v25, %v453_v20  ;;  %v908_v13 = vpop.f32.mrb[5].mxu1 }
 0x1aa   :  { %v909_v27 = vadd.f32 %v908_v13, %v461_v21 }
 0x1ab   :  { %v993_v14 = vcombine.low %v836_v23, %v838_v26 }
 0x1ac   :  { %v994_v10 = vcombine.low %v907_v11, %v909_v27 }
 0x1ad   :  { %v1001_v18 = vrot.slane %v993_v14, %v3542_v31 }
 0x1ae   :  { %v1008_v28 = vrot.slane %v994_v10, %v3542_v31 }
 0x1b0   :  { %v1009_v34 = vcombine.low %v1001_v18, %v1008_v28  ;;  %v1271_v42 = vcombine.high %v1001_v18, %v1008_v28 }
 0x1b2   :  { %v1016_v46 = vrot.slane %v1009_v34, %v3542_v31  ;;  %v1278_v47 = vrot.slane %v1271_v42, %v3542_v31 }
 0x1b4   :  { %v1020_v52 = vadd.f32 %v1659_v29, %v1016_v46  ;;  %v1052_v19 = vadd.f32 %v1668_v30, %v1016_v46  ;;  %v1081_v53 = vadd.f32 %v1677_v32, %v1016_v46  ;;  %v1110_v54 = vadd.f32 %v1686_v33, %v1016_v46 }
 0x1b5   :  { %v1139_v38 = vadd.f32 %v1695_v35, %v1016_v46  ;;  %v1168_v57 = vadd.f32 %v1704_v40, %v1016_v46  ;;  %v1197_v58 = vadd.f32 %v1713_v41, %v1016_v46  ;;  %v1226_v31 = vadd.f32 %v1722_v16, %v1016_v46 }
 0x1b6   :  { %1028 = vst.msk [vmem:[#allocation4 + $0x40] ss:$8 sm:$0xf] %vm3788_vm0, %v1020_v52  ;;  %1057 = vst.msk [vmem:[#allocation4 + $0x41] ss:$8 sm:$0xf] %vm3788_vm0, %v1052_v19  ;;  %v1282_v9 = vadd.f32 %v1731_v43, %v1278_v47  ;;  %v1311_v59 = vadd.f32 %v1740_v44, %v1278_v47  ;;  %v1340_v36 = vadd.f32 %v1749_v45, %v1278_v47 }
 0x1b7   :  { %1086 = vst.msk [vmem:[#allocation4 + $0x42] ss:$8 sm:$0xf] %vm3788_vm0, %v1081_v53  ;;  %1115 = vst.msk [vmem:[#allocation4 + $0x43] ss:$8 sm:$0xf] %vm3788_vm0, %v1110_v54  ;;  %v1369_v37 = vadd.f32 %v1758_v48, %v1278_v47  ;;  %v1398_v39 = vadd.f32 %v1767_v49, %v1278_v47  ;;  %v1427_v60 = vadd.f32 %v1776_v51, %v1278_v47 }
 0x1b8   :  { %1144 = vst.msk [vmem:[#allocation4 + $0x44] ss:$8 sm:$0xf] %vm3788_vm0, %v1139_v38  ;;  %1173 = vst.msk [vmem:[#allocation4 + $0x45] ss:$8 sm:$0xf] %vm3788_vm0, %v1168_v57  ;;  %v1456_v61 = vadd.f32 %v1785_v55, %v1278_v47  ;;  %v1485_v62 = vadd.f32 %v1794_v56, %v1278_v47 }
 0x1b9   :  { %1202 = vst.msk [vmem:[#allocation4 + $0x46] ss:$8 sm:$0xf] %vm3788_vm0, %v1197_v58  ;;  %1231 = vst.msk [vmem:[#allocation4 + $0x47] ss:$8 sm:$0xf] %vm3788_vm0, %v1226_v31 }
 0x1ba   :  { %1287 = vst.msk [vmem:[#allocation4 + $0xa0] ss:$8 sm:$0xf] %vm3788_vm0, %v1282_v9  ;;  %1316 = vst.msk [vmem:[#allocation4 + $0xa1] ss:$8 sm:$0xf] %vm3788_vm0, %v1311_v59 }
 0x1bb   :  { %1345 = vst.msk [vmem:[#allocation4 + $0xa2] ss:$8 sm:$0xf] %vm3788_vm0, %v1340_v36  ;;  %1374 = vst.msk [vmem:[#allocation4 + $0xa3] ss:$8 sm:$0xf] %vm3788_vm0, %v1369_v37 }
 0x1bc   :  { %1403 = vst.msk [vmem:[#allocation4 + $0xa4] ss:$8 sm:$0xf] %vm3788_vm0, %v1398_v39  ;;  %1432 = vst.msk [vmem:[#allocation4 + $0xa5] ss:$8 sm:$0xf] %vm3788_vm0, %v1427_v60 }
 0x1bd   :  { %1461 = vst.msk [vmem:[#allocation4 + $0xa6] ss:$8 sm:$0xf] %vm3788_vm0, %v1456_v61  ;;  %1490 = vst.msk [vmem:[#allocation4 + $0xa7] ss:$8 sm:$0xf] %vm3788_vm0, %v1485_v62 }
 0x1be   :  { %2240 = shalt.err (!%p2237_p13)
}
 0x1bf   :  { %s3859_s16 = sld [smem:[#allocation9_spill]] }
 0x1c5   :  { %s2241_s19 = scalar_lea.hbm %s3859_s16, 3072 }
 0x1c6   :  { %p2242_p0 = scmp.ne.s32.totalorder %s3859_s16, %s2241_s19  ;;  %p2245_p1 = scmp.lt.u32.totalorder %s2241_s19, %s3859_s16 }
 0x1c8   :  { %p2247_p2 = pnand %p2245_p1, %p2242_p0 }
 0x1ca   :  { %2250 = shalt.err (!%p2247_p2)
}
 0x1cb   :  { %s2258_s20 = smov 1536   ;;  %s2259_s22 = smov 96  }
 0x1cc   :  { %1503 = dma.vmem_to_hbm [thread:$0]  %s3803_s18, 3072, %s3859_s16, [#allocation5], %s2258_s20, %s2258_s20, %s2259_s22  }
 0x1cd   :  { %2253 = dma.done.wait [#allocation5], 3072  }
 0x1ce   :  { %2254 = vsyncadd [#allocation5], 4294964224 }
 0x1cf   :  { %1507 = vsyncpa [#allocation5], 1 }

</bundles_post_ra>
